<compile_context>
chip_gen: v6e
topology: v6e:2x2x1
jax: 0.10.0
libtpu: 0.0.40
codegen_flags: <defaults>
</compile_context>

<pallas_src>
import math

import jax
import jax.numpy as jnp
from jax import lax
from jax.experimental import pallas as pl
from jax.experimental.pallas import tpu as pltpu


def _round_up(x: int, m: int) -> int:
    return ((x + m - 1) // m) * m


# --------------------------------------------------------------------------- #
# Fused ResidualBlock forward (channel-first [B, C, T], lane = time)           #
# --------------------------------------------------------------------------- #
def residual_block_forward(params, x, conditioner, diffusion_step, *, t_tile=512):
    """x: [B,C,T], conditioner: [B,E,T], diffusion_step: [B,C]
    returns ((x + residual)/sqrt(2), skip), each [B,C,T]."""
    B, C, T = x.shape
    E = conditioner.shape[1]
    C2 = 2 * C
    out_dtype = x.dtype
    f32 = jnp.float32
    bf16 = jnp.bfloat16

    # Tiny diffusion projection (LinearNorm, bias=False) in XLA; added in-kernel.
    diff = jnp.einsum("bk,nk->bn", diffusion_step, params["w_diff"],
                      precision=lax.Precision.HIGHEST).astype(f32)[:, :, None]  # [B,C,1]

    # Lane-dense T tile (multiple of 128); zero-pad T up to a multiple of it.
    tT = max(128, min(_round_up(t_tile, 128), _round_up(T, 128)))
    Tp = _round_up(T, tT)
    nT = Tp // tT
    needs_mask = Tp != T
    if needs_mask:
        x_p = jnp.pad(x, ((0, 0), (0, 0), (0, Tp - T)))
        cond_p = jnp.pad(conditioner, ((0, 0), (0, 0), (0, Tp - T)))
    else:
        x_p, cond_p = x, conditioner

    # Halo columns for the k=3 conv at T-tile edges (already include +diff):
    #   halo[t, b, :, 0] = y[b, :, t*tT - 1]   (0 for t == 0  -> conv zero pad)
    #   halo[t, b, :, 1] = y[b, :, (t+1)*tT]   (0 for the last tile)
    zcol = jnp.zeros((B, C, 1), f32)
    xl = x_p[:, :, tT - 1::tT][:, :, :nT - 1].astype(f32) + diff          # [B,C,nT-1]
    xr = x_p[:, :, tT::tT].astype(f32) + diff                             # [B,C,nT-1]
    left = jnp.concatenate([zcol, xl], axis=2)                            # [B,C,nT]
    right = jnp.concatenate([xr, zcol], axis=2)                           # [B,C,nT]
    halo = jnp.transpose(jnp.stack([left, right], axis=-1), (2, 0, 1, 3))  # [nT,B,C,2]

    # Merged weights / combined biases (bf16 weights for the MXU).
    w_full = jnp.concatenate([params["w_conv"], params["w_cond"]], axis=1).astype(bf16)  # [2C,3C+E]
    w_out = params["w_out"].astype(bf16)                                                 # [2C,C]
    biases = jnp.stack([params["b_conv"] + params["b_cond"], params["b_out"]],
                       axis=1).astype(f32)                                               # [2C,2]

    def kernel(x_ref, diff_ref, cond_ref, halo_ref, wfull_ref, bias_ref, wout_ref,
               res_ref, skip_ref, stk_ref):
        xb = x_ref[0].astype(f32)                              # [C, tT]
        db = diff_ref[0].astype(f32)                           # [C, 1]
        y = xb + db
        lane = lax.broadcasted_iota(jnp.int32, (1, tT), 1)
        if needs_mask:
            # Zero y on zero-padded columns so the k=3 conv sees true zero padding.
            col = pl.program_id(1) * tT + lane
            y = jnp.where(col < T, y, 0.0)

        halo_cols = halo_ref[0, 0].astype(f32)                 # [C, 2]
        tap_prev = jnp.where(lane == 0, halo_cols[:, 0:1],
                             pltpu.roll(y, shift=1, axis=1))          # y[:, t-1]
        tap_next = jnp.where(lane == tT - 1, halo_cols[:, 1:2],
                             pltpu.roll(y, shift=tT - 1, axis=1))     # y[:, t+1]

        # Stack [y(t-1); y(t); y(t+1); conditioner] -> one deep MXU contraction.
        stk_ref[0:C, :] = tap_prev.astype(bf16)
        stk_ref[C:2 * C, :] = y.astype(bf16)
        stk_ref[2 * C:3 * C, :] = tap_next.astype(bf16)
        stk_ref[3 * C:, :] = cond_ref[0].astype(bf16)

        z = jnp.dot(wfull_ref[...], stk_ref[...], preferred_element_type=f32)  # [2C,tT]
        z = z + bias_ref[:, 0:1]
        g = (jax.nn.sigmoid(z[:C, :]) * jnp.tanh(z[C:, :])).astype(bf16)        # [C,tT]
        out = jnp.dot(wout_ref[...], g, preferred_element_type=f32)             # [2C,tT]
        out = out + bias_ref[:, 1:2]

        res_ref[0] = ((xb + out[:C, :]) * (1.0 / math.sqrt(2.0))).astype(res_ref.dtype)
        skip_ref[0] = out[C:, :].astype(skip_ref.dtype)

    itemsize = jnp.dtype(out_dtype).itemsize
    flops = 2 * B * Tp * (C2 * (3 * C + E) + C2 * C)
    bytes_accessed = (itemsize * (3 * B * C * Tp + B * E * Tp)
                      + 4 * (B * C + 2 * B * C * nT + 2 * C2)
                      + 2 * (C2 * (3 * C + E) + C2 * C))

    # TODO(synk): single-buffer the grid-invariant weight specs (pl.Buffered) and
    #             set vmem_limit_bytes explicitly if production C/T push block
    #             sizes past the scoped VMEM default.
    res, skip = pl.pallas_call(
        kernel,
        out_shape=(jax.ShapeDtypeStruct((B, C, Tp), out_dtype),
                   jax.ShapeDtypeStruct((B, C, Tp), out_dtype)),
        grid_spec=pltpu.PrefetchScalarGridSpec(
            num_scalar_prefetch=0,
            grid=(B, nT),
            in_specs=[
                pl.BlockSpec((1, C, tT), lambda b, t: (b, 0, t)),        # x tile
                pl.BlockSpec((1, C, 1), lambda b, t: (b, 0, 0)),         # diff (per batch)
                pl.BlockSpec((1, E, tT), lambda b, t: (b, 0, t)),        # conditioner tile
                pl.BlockSpec((1, 1, C, 2), lambda b, t: (t, b, 0, 0)),   # halo columns
                pl.BlockSpec((C2, 3 * C + E), lambda b, t: (0, 0)),      # merged conv|cond weight
                pl.BlockSpec((C2, 2), lambda b, t: (0, 0)),              # combined biases
                pl.BlockSpec((C2, C), lambda b, t: (0, 0)),              # output-proj weight
            ],
            out_specs=(pl.BlockSpec((1, C, tT), lambda b, t: (b, 0, t)),
                       pl.BlockSpec((1, C, tT), lambda b, t: (b, 0, t))),
            scratch_shapes=[pltpu.VMEM((3 * C + E, tT), bf16)],
        ),
        compiler_params=pltpu.CompilerParams(
            dimension_semantics=("parallel", "parallel"),
        ),
        cost_estimate=pl.CostEstimate(
            flops=flops, transcendentals=3 * B * C * Tp, bytes_accessed=bytes_accessed),
    )(x_p, diff, cond_p, halo, w_full, biases, w_out)

    if needs_mask:
        res, skip = res[:, :, :T], skip[:, :, :T]
    return res, skip


# --------------------------- parameter construction ------------------------ #
def init_residual_block_params(key, d_encoder, residual_channels, dtype=jnp.float32):
    """Init mirroring the PyTorch module (xavier_uniform / kaiming_normal)."""
    C, E = residual_channels, d_encoder
    C2 = 2 * C
    k = jax.random.split(key, 7)

    def kaiming(kk, shape, fan_in):
        return (math.sqrt(2.0 / fan_in) * jax.random.normal(kk, shape)).astype(dtype)

    def conv_bias(kk, n, fan_in):
        bound = 1.0 / math.sqrt(fan_in)
        return jax.random.uniform(kk, (n,), dtype, minval=-bound, maxval=bound)

    xav = math.sqrt(6.0 / (C + C))
    return {
        "w_diff": jax.random.uniform(k[0], (C, C), dtype, minval=-xav, maxval=xav),
        "w_conv": kaiming(k[1], (C2, 3 * C), fan_in=3 * C),   # k=3 taps unfolded
        "b_conv": conv_bias(k[2], C2, fan_in=3 * C),
        "w_cond": kaiming(k[3], (C2, E), fan_in=E),
        "b_cond": conv_bias(k[4], C2, fan_in=E),
        "w_out":  kaiming(k[5], (C2, C), fan_in=C),
        "b_out":  conv_bias(k[6], C2, fan_in=C),
    }


# ------------------------------- pure-JAX reference ------------------------ #
def residual_block_reference(params, x, conditioner, diffusion_step):
    """Reference matching the PyTorch forward; matmul operands are cast to bf16
    (with f32 accumulation) to match the kernel's MXU precision."""
    B, C, T = x.shape
    bf16 = jnp.bfloat16
    hp = lax.Precision.HIGHEST
    diff = jnp.einsum("bk,nk->bn", diffusion_step, params["w_diff"],
                      precision=hp)[:, :, None]
    y = (x + diff).astype(jnp.float32)
    y_pad = jnp.pad(y, ((0, 0), (0, 0), (1, 1)))
    stacked = jnp.concatenate(
        [y_pad[:, :, 0:T], y_pad[:, :, 1:T + 1], y_pad[:, :, 2:T + 2],
         conditioner.astype(jnp.float32)], axis=1).astype(bf16)              # [B,3C+E,T]
    w_full = jnp.concatenate([params["w_conv"], params["w_cond"]], axis=1).astype(bf16)
    z = jnp.einsum("nk,bkt->bnt", w_full, stacked,
                   preferred_element_type=jnp.float32)
    z = z + (params["b_conv"] + params["b_cond"])[None, :, None]
    g = (jax.nn.sigmoid(z[:, :C]) * jnp.tanh(z[:, C:])).astype(bf16)
    out = jnp.einsum("nk,bkt->bnt", params["w_out"].astype(bf16), g,
                     preferred_element_type=jnp.float32)
    out = out + params["b_out"][None, :, None]
    return (x + out[:, :C]) / math.sqrt(2.0), out[:, C:]


if __name__ == "__main__":
    key = jax.random.PRNGKey(0)
    k_p, k_x, _, _ = jax.random.split(key, 4)

    B, C, E = 2, 64, 32
    params = init_residual_block_params(k_p, d_encoder=E, residual_channels=C)

    fwd = jax.jit(residual_block_forward, static_argnames=("t_tile",))

    # Config 1 (T=200, tile=128): exercises T-tiling, halo columns and zero-pad
    # masking.  Config 2 (T=128): single tile, no padding.
    for (T, t_tile) in ((200, 128), (128, 512)):
        kx, kc, kd = jax.random.split(jax.random.fold_in(k_x, T), 3)
        x = jax.random.normal(kx, (B, C, T), dtype=jnp.float32)
        conditioner = jax.random.normal(kc, (B, E, T), dtype=jnp.float32)
        diffusion_step = jax.random.normal(kd, (B, C), dtype=jnp.float32)

        res, skip = jax.block_until_ready(
            fwd(params, x, conditioner, diffusion_step, t_tile=t_tile))
        res_ref, skip_ref = residual_block_reference(params, x, conditioner,
                                                     diffusion_step)

        assert res.shape == (B, C, T) and skip.shape == (B, C, T)
        assert jnp.allclose(res, res_ref, atol=5e-3, rtol=5e-3), \
            (T, float(jnp.max(jnp.abs(res - res_ref))))
        assert jnp.allclose(skip, skip_ref, atol=5e-3, rtol=5e-3), \
            (T, float(jnp.max(jnp.abs(skip - skip_ref))))

    print("KERNEL_OK")
</pallas_src>

<mosaic_0001>
module attributes {stable_mosaic.version = 11 : i64} {
  func.func @kernel(%arg0: i32, %arg1: i32, %arg2: memref<1x64x128xf32, #tpu.memory_space<vmem>>, %arg3: memref<1x64x1xf32, #tpu.memory_space<vmem>>, %arg4: memref<1x32x128xf32, #tpu.memory_space<vmem>>, %arg5: memref<1x1x64x2xf32, #tpu.memory_space<vmem>>, %arg6: memref<128x224xbf16, #tpu.memory_space<vmem>>, %arg7: memref<128x2xf32, #tpu.memory_space<vmem>>, %arg8: memref<128x64xbf16, #tpu.memory_space<vmem>>, %arg9: memref<1x64x128xf32, #tpu.memory_space<vmem>>, %arg10: memref<1x64x128xf32, #tpu.memory_space<vmem>>, %arg11: memref<224x128xbf16, #tpu.memory_space<vmem>>) attributes {dimension_semantics = [#tpu.dimension_semantics<parallel>, #tpu.dimension_semantics<parallel>], iteration_bounds = array<i64: 2, 2>, scalar_prefetch = 0 : i64, scratch_operands = 1 : i64, tpu.core_type = #tpu.core_type<tc>, window_params = [{transform_indices = @transform_0, window_bounds = array<i64: 1, 64, 128>}, {transform_indices = @transform_1, window_bounds = array<i64: 1, 64, 1>}, {transform_indices = @transform_2, window_bounds = array<i64: 1, 32, 128>}, {transform_indices = @transform_3, window_bounds = array<i64: 1, 1, 64, 2>}, {pipeline_mode = #tpu.pipeline_mode<synchronous>, transform_indices = @transform_4, window_bounds = array<i64: 128, 224>}, {pipeline_mode = #tpu.pipeline_mode<synchronous>, transform_indices = @transform_5, window_bounds = array<i64: 128, 2>}, {pipeline_mode = #tpu.pipeline_mode<synchronous>, transform_indices = @transform_6, window_bounds = array<i64: 128, 64>}, {transform_indices = @transform_7, window_bounds = array<i64: 1, 64, 128>}, {transform_indices = @transform_8, window_bounds = array<i64: 1, 64, 128>}]} {
    %c0 = arith.constant 0 : index
    %c0_0 = arith.constant 0 : index
    %c0_1 = arith.constant 0 : index
    %0 = vector.load %arg2[%c0, %c0_0, %c0_1] : memref<1x64x128xf32, #tpu.memory_space<vmem>>, vector<1x64x128xf32>
    %1 = vector.shape_cast %0 : vector<1x64x128xf32> to vector<64x128xf32>
    %c0_2 = arith.constant 0 : index
    %c0_3 = arith.constant 0 : index
    %c0_4 = arith.constant 0 : index
    %2 = vector.load %arg3[%c0_2, %c0_3, %c0_4] : memref<1x64x1xf32, #tpu.memory_space<vmem>>, vector<1x64x1xf32>
    %3 = vector.shape_cast %2 : vector<1x64x1xf32> to vector<64x1xf32>
    %4 = vector.broadcast %3 : vector<64x1xf32> to vector<64x128xf32>
    %5 = arith.addf %1, %4 : vector<64x128xf32>
    %6 = tpu.iota {dimensions = array<i32: 1>} : vector<1x128xi32>
    %c128_i32 = arith.constant 128 : i32
    %7 = arith.muli %arg1, %c128_i32 : i32
    %8 = vector.broadcast %7 : i32 to vector<1x128xi32>
    %9 = arith.addi %8, %6 : vector<1x128xi32>
    %c200_i32 = arith.constant 200 : i32
    %10 = vector.broadcast %c200_i32 : i32 to vector<1x128xi32>
    %11 = arith.cmpi slt, %9, %10 : vector<1x128xi32>
    %cst = arith.constant 0.000000e+00 : f32
    %12 = vector.shape_cast %11 : vector<1x128xi1> to vector<1x128xi1>
    %13 = vector.broadcast %12 : vector<1x128xi1> to vector<64x128xi1>
    %14 = vector.broadcast %cst : f32 to vector<64x128xf32>
    %15 = arith.select %13, %5, %14 : vector<64x128xi1>, vector<64x128xf32>
    %c0_5 = arith.constant 0 : index
    %c0_6 = arith.constant 0 : index
    %c0_7 = arith.constant 0 : index
    %c0_8 = arith.constant 0 : index
    %16 = vector.load %arg5[%c0_5, %c0_6, %c0_7, %c0_8] : memref<1x1x64x2xf32, #tpu.memory_space<vmem>>, vector<1x1x64x2xf32>
    %17 = vector.shape_cast %16 : vector<1x1x64x2xf32> to vector<64x2xf32>
    %c0_i32 = arith.constant 0 : i32
    %18 = vector.broadcast %c0_i32 : i32 to vector<1x128xi32>
    %19 = arith.cmpi eq, %6, %18 : vector<1x128xi32>
    %20 = vector.extract_strided_slice %17 {offsets = [0, 0], sizes = [64, 1], strides = [1, 1]} : vector<64x2xf32> to vector<64x1xf32>
    %c1_i32 = arith.constant 1 : i32
    %21 = tpu.dynamic_rotate %15 by %c1_i32 dim 1 : vector<64x128xf32>, i32 -> vector<64x128xf32>
    %22 = vector.shape_cast %19 : vector<1x128xi1> to vector<1x128xi1>
    %23 = vector.broadcast %22 : vector<1x128xi1> to vector<64x128xi1>
    %24 = vector.shape_cast %20 : vector<64x1xf32> to vector<64x1xf32>
    %25 = vector.broadcast %24 : vector<64x1xf32> to vector<64x128xf32>
    %26 = arith.select %23, %25, %21 : vector<64x128xi1>, vector<64x128xf32>
    %c127_i32 = arith.constant 127 : i32
    %27 = vector.broadcast %c127_i32 : i32 to vector<1x128xi32>
    %28 = arith.cmpi eq, %6, %27 : vector<1x128xi32>
    %29 = vector.extract_strided_slice %17 {offsets = [0, 1], sizes = [64, 1], strides = [1, 1]} : vector<64x2xf32> to vector<64x1xf32>
    %c127_i32_9 = arith.constant 127 : i32
    %30 = tpu.dynamic_rotate %15 by %c127_i32_9 dim 1 : vector<64x128xf32>, i32 -> vector<64x128xf32>
    %31 = vector.shape_cast %28 : vector<1x128xi1> to vector<1x128xi1>
    %32 = vector.broadcast %31 : vector<1x128xi1> to vector<64x128xi1>
    %33 = vector.shape_cast %29 : vector<64x1xf32> to vector<64x1xf32>
    %34 = vector.broadcast %33 : vector<64x1xf32> to vector<64x128xf32>
    %35 = arith.select %32, %34, %30 : vector<64x128xi1>, vector<64x128xf32>
    %36 = arith.truncf %26 : vector<64x128xf32> to vector<64x128xbf16>
    %c0_10 = arith.constant 0 : index
    %c0_11 = arith.constant 0 : index
    %37 = vector.load %arg11[%c0_10, %c0_11] : memref<224x128xbf16, #tpu.memory_space<vmem>>, vector<64x128xbf16>
    tpu.vector_store %arg11[%c0_10, %c0_11], %36 {strides = array<i32>} : memref<224x128xbf16, #tpu.memory_space<vmem>>, vector<64x128xbf16>,
    %38 = arith.truncf %15 : vector<64x128xf32> to vector<64x128xbf16>
    %c64 = arith.constant 64 : index
    %c0_12 = arith.constant 0 : index
    %39 = vector.load %arg11[%c64, %c0_12] : memref<224x128xbf16, #tpu.memory_space<vmem>>, vector<64x128xbf16>
    tpu.vector_store %arg11[%c64, %c0_12], %38 {strides = array<i32>} : memref<224x128xbf16, #tpu.memory_space<vmem>>, vector<64x128xbf16>,
    %40 = arith.truncf %35 : vector<64x128xf32> to vector<64x128xbf16>
    %c128 = arith.constant 128 : index
    %c0_13 = arith.constant 0 : index
    %41 = vector.load %arg11[%c128, %c0_13] : memref<224x128xbf16, #tpu.memory_space<vmem>>, vector<64x128xbf16>
    tpu.vector_store %arg11[%c128, %c0_13], %40 {strides = array<i32>} : memref<224x128xbf16, #tpu.memory_space<vmem>>, vector<64x128xbf16>,
    %c0_14 = arith.constant 0 : index
    %c0_15 = arith.constant 0 : index
    %c0_16 = arith.constant 0 : index
    %42 = vector.load %arg4[%c0_14, %c0_15, %c0_16] : memref<1x32x128xf32, #tpu.memory_space<vmem>>, vector<1x32x128xf32>
    %43 = vector.shape_cast %42 : vector<1x32x128xf32> to vector<32x128xf32>
    %44 = arith.truncf %43 : vector<32x128xf32> to vector<32x128xbf16>
    %c192 = arith.constant 192 : index
    %c0_17 = arith.constant 0 : index
    %45 = vector.load %arg11[%c192, %c0_17] : memref<224x128xbf16, #tpu.memory_space<vmem>>, vector<32x128xbf16>
    tpu.vector_store %arg11[%c192, %c0_17], %44 {strides = array<i32>} : memref<224x128xbf16, #tpu.memory_space<vmem>>, vector<32x128xbf16>,
    %c0_18 = arith.constant 0 : index
    %c0_19 = arith.constant 0 : index
    %46 = vector.load %arg6[%c0_18, %c0_19] : memref<128x224xbf16, #tpu.memory_space<vmem>>, vector<128x224xbf16>
    %c0_20 = arith.constant 0 : index
    %c0_21 = arith.constant 0 : index
    %47 = vector.load %arg11[%c0_20, %c0_21] : memref<224x128xbf16, #tpu.memory_space<vmem>>, vector<224x128xbf16>
    %cst_22 = arith.constant dense<0.000000e+00> : vector<128x128xf32>
    %48 = tpu.matmul %46, %47, %cst_22 {dimension_numbers = #tpu.dot_dimension_numbers<[1], [0], [0], [1], [0, 0, 1, 1], [], []>} : vector<128x224xbf16>, vector<224x128xbf16>, vector<128x128xf32> -> vector<128x128xf32>
    %c0_23 = arith.constant 0 : index
    %c0_24 = arith.constant 0 : index
    %49 = vector.load %arg7[%c0_23, %c0_24] : memref<128x2xf32, #tpu.memory_space<vmem>>, vector<128x1xf32>
    %50 = vector.broadcast %49 : vector<128x1xf32> to vector<128x128xf32>
    %51 = arith.addf %48, %50 : vector<128x128xf32>
    %52 = vector.extract_strided_slice %51 {offsets = [0, 0], sizes = [64, 128], strides = [1, 1]} : vector<128x128xf32> to vector<64x128xf32>
    %53 = arith.negf %52 : vector<64x128xf32>
    %54 = math.exp %53 : vector<64x128xf32>
    %cst_25 = arith.constant 1.000000e+00 : f32
    %55 = vector.broadcast %cst_25 : f32 to vector<64x128xf32>
    %56 = arith.addf %55, %54 : vector<64x128xf32>
    %57 = arith.divf %55, %56 : vector<64x128xf32>
    %58 = vector.extract_strided_slice %51 {offsets = [64, 0], sizes = [64, 128], strides = [1, 1]} : vector<128x128xf32> to vector<64x128xf32>
    %59 = math.tanh %58 : vector<64x128xf32>
    %60 = arith.mulf %57, %59 : vector<64x128xf32>
    %61 = arith.truncf %60 : vector<64x128xf32> to vector<64x128xbf16>
    %c0_26 = arith.constant 0 : index
    %c0_27 = arith.constant 0 : index
    %62 = vector.load %arg8[%c0_26, %c0_27] : memref<128x64xbf16, #tpu.memory_space<vmem>>, vector<128x64xbf16>
    %cst_28 = arith.constant dense<0.000000e+00> : vector<128x128xf32>
    %63 = tpu.matmul %62, %61, %cst_28 {dimension_numbers = #tpu.dot_dimension_numbers<[1], [0], [0], [1], [0, 0, 1, 1], [], []>} : vector<128x64xbf16>, vector<64x128xbf16>, vector<128x128xf32> -> vector<128x128xf32>
    %c0_29 = arith.constant 0 : index
    %c1 = arith.constant 1 : index
    %64 = vector.load %arg7[%c0_29, %c1] : memref<128x2xf32, #tpu.memory_space<vmem>>, vector<128x1xf32>
    %65 = vector.broadcast %64 : vector<128x1xf32> to vector<128x128xf32>
    %66 = arith.addf %63, %65 : vector<128x128xf32>
    %67 = vector.extract_strided_slice %66 {offsets = [0, 0], sizes = [64, 128], strides = [1, 1]} : vector<128x128xf32> to vector<64x128xf32>
    %68 = arith.addf %1, %67 : vector<64x128xf32>
    %cst_30 = arith.constant 0.707106769 : f32
    %69 = vector.broadcast %cst_30 : f32 to vector<64x128xf32>
    %70 = arith.mulf %68, %69 : vector<64x128xf32>
    %c0_31 = arith.constant 0 : index
    %c0_32 = arith.constant 0 : index
    %c0_33 = arith.constant 0 : index
    %71 = vector.load %arg9[%c0_31, %c0_32, %c0_33] : memref<1x64x128xf32, #tpu.memory_space<vmem>>, vector<1x64x128xf32>
    %72 = vector.shape_cast %71 : vector<1x64x128xf32> to vector<64x128xf32>
    %73 = vector.shape_cast %70 : vector<64x128xf32> to vector<1x64x128xf32>
    tpu.vector_store %arg9[%c0_31, %c0_32, %c0_33], %73 {strides = array<i32>} : memref<1x64x128xf32, #tpu.memory_space<vmem>>, vector<1x64x128xf32>,
    %74 = vector.extract_strided_slice %66 {offsets = [64, 0], sizes = [64, 128], strides = [1, 1]} : vector<128x128xf32> to vector<64x128xf32>
    %c0_34 = arith.constant 0 : index
    %c0_35 = arith.constant 0 : index
    %c0_36 = arith.constant 0 : index
    %75 = vector.load %arg10[%c0_34, %c0_35, %c0_36] : memref<1x64x128xf32, #tpu.memory_space<vmem>>, vector<1x64x128xf32>
    %76 = vector.shape_cast %75 : vector<1x64x128xf32> to vector<64x128xf32>
    %77 = vector.shape_cast %74 : vector<64x128xf32> to vector<1x64x128xf32>
    tpu.vector_store %arg10[%c0_34, %c0_35, %c0_36], %77 {strides = array<i32>} : memref<1x64x128xf32, #tpu.memory_space<vmem>>, vector<1x64x128xf32>,
    return
  }
  func.func @transform_0(%arg0: i32, %arg1: i32) -> (i32, i32, i32) {
    %c0_i32 = arith.constant 0 : i32
    %c0_i32_0 = arith.constant 0 : i32
    return %arg0, %c0_i32, %arg1 : i32, i32, i32
  }
  func.func @transform_1(%arg0: i32, %arg1: i32) -> (i32, i32, i32) {
    %c0_i32 = arith.constant 0 : i32
    %c0_i32_0 = arith.constant 0 : i32
    %c0_i32_1 = arith.constant 0 : i32
    return %arg0, %c0_i32, %c0_i32_0 : i32, i32, i32
  }
  func.func @transform_2(%arg0: i32, %arg1: i32) -> (i32, i32, i32) {
    %c0_i32 = arith.constant 0 : i32
    %c0_i32_0 = arith.constant 0 : i32
    return %arg0, %c0_i32, %arg1 : i32, i32, i32
  }
  func.func @transform_3(%arg0: i32, %arg1: i32) -> (i32, i32, i32, i32) {
    %c0_i32 = arith.constant 0 : i32
    %c0_i32_0 = arith.constant 0 : i32
    %c0_i32_1 = arith.constant 0 : i32
    return %arg1, %arg0, %c0_i32, %c0_i32_0 : i32, i32, i32, i32
  }
  func.func @transform_4(%arg0: i32, %arg1: i32) -> (i32, i32) {
    %c0_i32 = arith.constant 0 : i32
    %c0_i32_0 = arith.constant 0 : i32
    %c0_i32_1 = arith.constant 0 : i32
    return %c0_i32, %c0_i32_0 : i32, i32
  }
  func.func @transform_5(%arg0: i32, %arg1: i32) -> (i32, i32) {
    %c0_i32 = arith.constant 0 : i32
    %c0_i32_0 = arith.constant 0 : i32
    %c0_i32_1 = arith.constant 0 : i32
    return %c0_i32, %c0_i32_0 : i32, i32
  }
  func.func @transform_6(%arg0: i32, %arg1: i32) -> (i32, i32) {
    %c0_i32 = arith.constant 0 : i32
    %c0_i32_0 = arith.constant 0 : i32
    %c0_i32_1 = arith.constant 0 : i32
    return %c0_i32, %c0_i32_0 : i32, i32
  }
  func.func @transform_7(%arg0: i32, %arg1: i32) -> (i32, i32, i32) {
    %c0_i32 = arith.constant 0 : i32
    %c0_i32_0 = arith.constant 0 : i32
    return %arg0, %c0_i32, %arg1 : i32, i32, i32
  }
  func.func @transform_8(%arg0: i32, %arg1: i32) -> (i32, i32, i32) {
    %c0_i32 = arith.constant 0 : i32
    %c0_i32_0 = arith.constant 0 : i32
    return %arg0, %c0_i32, %arg1 : i32, i32, i32
  }
}

</mosaic_0001>

<bundles_post_ra>
// kernel: residual_block_forward.1
= control target key start
LH: loop header
LB: loop body
LE: loop exit
PB: predicated region body
PF: predicated region fallthrough
CT: control target
= control target key end

     0   :  { %s3137_s0 = inlined_call_operand.vmem [shape: f32[2,64,256], index: 0, kind: input, shape index: {}]   ;;  %s3138_s1 = inlined_call_operand.vmem [shape: f32[2,64,1], index: 1, kind: input, shape index: {}]   ;;  %s3139_s2 = inlined_call_operand.vmem [shape: f32[2,32,256], index: 2, kind: input, shape index: {}]   ;;  %s3140_s3 = inlined_call_operand.vmem [shape: f32[2,2,64,2], index: 3, kind: input, shape index: {}]   ;;  %s3141_s4 = inlined_call_operand.vmem [shape: bf16[128,224], index: 4, kind: input, shape index: {}]   ;;  %s3142_s5 = inlined_call_operand.vmem [shape: f32[128,2], index: 5, kind: input, shape index: {}]   ;;  %s3143_s6 = inlined_call_operand.vmem [shape: bf16[128,64], index: 6, kind: input, shape index: {}]   ;;  %s3144_s7 = inlined_call_operand.hbm [shape: f32[2,64,256], index: 7, kind: output, shape index: {0}]   ;;  %s3145_s8 = inlined_call_operand.hbm [shape: f32[2,64,256], index: 8, kind: output, shape index: {1}]  }
   0x1   :  { %3150 = sst [smem:[#allocation13_spill]] %s3137_s0 }
   0x2   :  { %3151 = sst [smem:[#allocation14_spill]] %s3138_s1 }
   0x3   :  { %14 = vsyncpa [#allocation6], 0 }
   0x4   :  { %16 = vsyncpa [#allocation6 + $0x1], 0 }
   0x5   :  { %17 = vsyncpa [#allocation8], 0 }
   0x6   :  { %19 = vsyncpa [#allocation8 + $0x1], 0  ;;  %s2591_s27 = smov 0   ;;  %s2593_s28 = smov 0  }
   0x7   :  { %s2595_s29 = smov 0   ;;  %s2597_s30 = smov 0  }
   0x8   :  { %s2599_s9 = smov 0   ;;  %s2601_s10 = smov 0  }
   0x9   :  { %s2603_s11 = smov 0   ;;  %s2605_s12 = smov 0  }
   0xa LB: > { %s1849_s13 = sadd.s32 4294967295, %s2535_s12   ;;  %s1850_s14 = sadd.s32 4294967294, %s2535_s12   ;;  %s2535_s12 = sphi %s2605_s12, %s25_s12   ;;  %s2531_s11 = sphi %s2603_s11, %s3169_s11   ;;  %s2527_s10 = sphi %s2601_s10, %s3168_s10   ;;  %s2523_s9 = sphi %s2599_s9, %s3167_s9   ;;  %s2519_s30 = sphi %s2597_s30, %s3166_s30   ;;  %s2515_s29 = sphi %s2595_s29, %s3165_s29   ;;  %s2511_s28 = sphi %s2593_s28, %s3164_s28   ;;  %s2507_s27 = sphi %s2591_s27, %s3163_s27  }
   0xb   : > { %s34_s15 = sadd.s32 1, %s2527_s10  ;;  %s37_s16 = sadd.s32 1, %s2531_s11 }
   0xc   : > { %p35_p0 = scmp.ge.s32.totalorder %s34_s15, 2  ;;  %p53_p1 = scmp.ne.s32.totalorder %s2515_s29, %s2511_s28 }
   0xd   : > { %p54_p2 = scmp.eq.s32.totalorder %s2535_s12, 0  ;;  %p230_p5 = scmp.eq.s32.totalorder %s1849_s13, 3 }
   0xe   : > { %s3171_s15 = smov (%p35_p0, %s34_s15), 0  ;;  %s3173_s16 = smov (!%p35_p0, %s37_s16), %s2531_s11 }
   0xf   : > { %3152 = sst [smem:[#allocation11_spill]] %s3171_s15  ;;  %s42_s17 = ssub.s32 %s2527_s10, %s3171_s15 }
  0x10   : > { %p2643_p3 = por %p54_p2, %p53_p1  ;;  %p39_p4 = scmp.ge.s32.totalorder %s3173_s16, 2 }
  0x11   : > { %p235_p6 = scmp.ne.s32.totalorder %s2511_s28, %s2507_s27  ;;  %p236_p7 = scmp.eq.s32.totalorder %s1850_s14, 3 }
  0x12   : > { %s3175_s16 = smov (%p39_p4, %s3173_s16), 0  ;;  %p2651_p8 = por %p230_p5, %p53_p1 }
  0x13   : > { %3154 = sst [smem:[#allocation12_spill]] %s3175_s16  ;;  %p2655_p9 = por %p236_p7, %p235_p6 }
  0x14   : > { %s41_s21 = ssub.s32 %s2531_s11, %s3175_s16  ;;  %s46_s23 = sadd.s32 1, %s2515_s29 }
  0x15   : > { %s43_s22 = sor.u32 %s42_s17, %s41_s21  ;;  %p1852_p11 = scmp.ge.s32.totalorder %s2535_s12, 4 }
  0x16   : > { %p44_p10 = scmp.eq.s32.totalorder %s43_s22, 0 }
  0x17   : > { %289 = sbr.rel (%p1852_p11) target bundleno = 50 (0x32), region = 28 }
  0x18   : > { %s2663_s24 = scalar_select %p44_p10, %s2515_s29, %s46_s23  }
  0x1c   : > { %292 = sbr.rel (!%p2643_p3) target bundleno = 42 (0x2a), region = 32  ;;  %s294_s25 = sand.u32 (%p2643_p3), 1, %s2515_s29  }
  0x1d   : > { %s1854_s26 = sshll.u32 (%p2643_p3), %s2531_s11, 4  ;;  %s1853_s13 = sshll.u32 (%p2643_p3), %s294_s25, 6 }
  0x1e   : > { %s298_s14 = sadd.s32 (%p2643_p3), %s2527_s10, %s1854_s26  ;;  %s3157_s0 = sld [smem:[#allocation13_spill]] (%p2643_p3) }
  0x1f   : > { %s1855_s15 = sshll.u32 (%p2643_p3), %s298_s14, 3  ;;  %s296_s22 = scalar_lea.vmem (%p2643_p3), [#allocation3], %s1853_s13 }
  0x24   : > { %s300_s21 = scalar_lea.vmem %s3157_s0, %s1855_s15 }
  0x25   : > { %v343_v0 = vld [vmem:[%s300_s21] sm:$0xff]  ;;  %v345_v1 = vld [vmem:[%s300_s21 + $0x10] sm:$0xff] }
  0x26   : > { %v347_v2 = vld [vmem:[%s300_s21 + $0x20] sm:$0xff]  ;;  %344 = vst [vmem:[%s296_s22] sm:$0xff] %v343_v0  ;;  %346 = vst [vmem:[%s296_s22 + $0x8] sm:$0xff] %v345_v1  ;;  %v349_v3 = vld [vmem:[%s300_s21 + $0x30] sm:$0xff] }
  0x27   : > { %348 = vst [vmem:[%s296_s22 + $0x10] sm:$0xff] %v347_v2  ;;  %v351_v4 = vld [vmem:[%s300_s21 + $0x40] sm:$0xff]  ;;  %v353_v5 = vld [vmem:[%s300_s21 + $0x50] sm:$0xff]  ;;  %350 = vst [vmem:[%s296_s22 + $0x18] sm:$0xff] %v349_v3 }
  0x28   : > { %352 = vst [vmem:[%s296_s22 + $0x20] sm:$0xff] %v351_v4  ;;  %354 = vst [vmem:[%s296_s22 + $0x28] sm:$0xff] %v353_v5  ;;  %v355_v6 = vld [vmem:[%s300_s21 + $0x60] sm:$0xff]  ;;  %v357_v7 = vld [vmem:[%s300_s21 + $0x70] sm:$0xff] }
  0x29   : > { %356 = vst [vmem:[%s296_s22 + $0x30] sm:$0xff] %v355_v6  ;;  %358 = vst [vmem:[%s296_s22 + $0x38] sm:$0xff] %v357_v7 }
  0x2a PF: > { %372 = sbr.rel (!%p2643_p3) target bundleno = 50 (0x32), region = 74  ;;  %s374_s15 = sand.u32 (%p2643_p3), 1, %s2515_s29  }
  0x2b   : > { %s1857_s16 = sshll.u32 (%p2643_p3), %s2531_s11, 3  ;;  %s1856_s23 = sshll.u32 (%p2643_p3), %s374_s15, 5 }
  0x2c   : > { %s378_s25 = sadd.s32 (%p2643_p3), %s2527_s10, %s1857_s16  ;;  %s376_s21 = scalar_lea.vmem (%p2643_p3), [#allocation4], %s1856_s23 }
  0x2d   : > { %s1858_s26 = sshll.u32 (%p2643_p3), %s378_s25, 3 }
  0x2e   : > { %s380_s17 = scalar_lea.vmem (%p2643_p3), %s3139_s2, %s1858_s26 }
  0x2f   : > { %v415_v8 = vld [vmem:[%s380_s17] sm:$0xff]  ;;  %v417_v9 = vld [vmem:[%s380_s17 + $0x10] sm:$0xff] }
  0x30   : > { %v419_v10 = vld [vmem:[%s380_s17 + $0x20] sm:$0xff]  ;;  %416 = vst [vmem:[%s376_s21] sm:$0xff] %v415_v8  ;;  %418 = vst [vmem:[%s376_s21 + $0x8] sm:$0xff] %v417_v9  ;;  %v421_v11 = vld [vmem:[%s380_s17 + $0x30] sm:$0xff] }
  0x31   : > { %420 = vst [vmem:[%s376_s21 + $0x10] sm:$0xff] %v419_v10  ;;  %422 = vst [vmem:[%s376_s21 + $0x18] sm:$0xff] %v421_v11 }
  0x32 PF: > { %p1859_p12 = scmp.ge.s32.totalorder %s2535_s12, 1  ;;  %p439_p13 = scmp.lt.s32.totalorder %s2535_s12, 5 }
  0x34   : > { %p440_p0 = pnand %p1859_p12, %p439_p13 }
  0x35   : > { %p509_p1 = scmp.lt.s32.totalorder (!%p440_p0), %s2523_s9, 1  ;;  %p514_p2 = scmp.lt.s32.totalorder (!%p440_p0), %s2519_s30, 1 }
  0x36   : > { %443 = sbr.rel (%p440_p0) target bundleno = 893 (0x37d), region = 116  ;;  %s3158_s1 = sld [smem:[#allocation14_spill]] (!%p440_p0) }
  0x37   : > { %s2696_s17 = sand.u32 (!%p440_p0), 1, %s2511_s28   ;;  %s2541_s23 = smov (!%p440_p0), [#allocation5]  }
  0x38   : > { %s1861_s0 = sshll.u32 (!%p440_p0), %s2696_s17, 5 }
  0x3b   : > { %v2537_v12 = vmov 0   ;;  %s510_s18 = scalar_select %p509_p1, %s2523_s9, 1  ;;  %v2538_v39 = vmov 1   ;;  %v588_v40 = vlaneseq  ;;  %vm1178_vm1 = vcmask 785408  }
  0x3c   : > { %2228 = vset.pattern.permute.xlu1 %v2537_v12  ;;  %2227 = vset.pattern.permute.xlu0 %v2537_v12  ;;  %s515_s22 = scalar_select %p514_p2, %s2519_s30, 1  ;;  %vm1488_vm4 = vcmask 523264  }
  0x3d   : > { %1203 = vmatprep.subr.bf16.mxu0 %v2537_v12  ;;  %2116 = vmatprep.subr.bf16.mxu1 %v2537_v12  ;;  %s1968_s15 = sshll.u32 %s510_s18, 6  ;;  %s1866_s16 = sshll.u32 %s510_s18, 3  ;;  %v2720_v41 = vand.u32 127, %v588_v40  ;;  %v2839_v40 = vld [vmem:[%s3142_s5 + $0x68] sm:$0xff] }
  0x3e   : > { %s513_s26 = scalar_lea.vmem %s3158_s1, %s1968_s15  ;;  %s1867_s13 = sshll.u32 %s515_s22, 4 }
  0x3f   : > { %v538_v13 = vld [vmem:[%s513_s26 + $0x30] sm:$0xff]  ;;  %v536_v14 = vld [vmem:[%s513_s26 + $0x20] sm:$0xff]  ;;  %s520_s14 = sadd.s32 %s1867_s13, %s1866_s16  ;;  %v539_v15 = vld [vmem:[%s513_s26 + $0x38] sm:$0xff]  ;;  %s455_s15 = scalar_lea.vmem [#allocation4], %s1861_s0  ;;  %vm612_vm2 = vcmp.eq.s32.totalorder %v2720_v41, 0  ;;  %vm679_vm3 = vcmp.eq.s32.totalorder %v2720_v41, 127 }
  0x40   : > { %572 = vperm.xlu0 %2227, %v538_v13   ;;  %562 = vperm.xlu1 %2228, %v536_v14   ;;  %v537_v16 = vld [vmem:[%s513_s26 + $0x28] sm:$0xff]  ;;  %s1868_s21 = sshll.u32 %s520_s14, 3  ;;  %v535_v17 = vld [vmem:[%s513_s26 + $0x18] sm:$0xff]  ;;  %v534_v18 = vld [vmem:[%s513_s26 + $0x10] sm:$0xff]  ;;  %s1869_s0 = sshll.u32 %s2519_s30, 7 }
  0x41   : > { %s522_s22 = scalar_lea.vmem %s3140_s3, %s1868_s21  ;;  %v858_v19 = vld [vmem:[%s455_s15] sm:$0xff]  ;;  %v859_v20 = vld [vmem:[%s455_s15 + $0x8] sm:$0xff]  ;;  %v860_v21 = vld [vmem:[%s455_s15 + $0x10] sm:$0xff]  ;;  %s2718_s16 = sshll.u32 %s2696_s17, 6  ;;  %v591_v42 = vstv %s1869_s0 }
  0x42   : > { %v861_v22 = vld [vmem:[%s455_s15 + $0x18] sm:$0xff]  ;;  %v2060_v23 = vpack.c.bf16 %v859_v20, %v858_v19  ;;  %v532_v26 = vld [vmem:[%s513_s26] sm:$0xff]  ;;  %v610_v29 = vld [vmem:[%s522_s22 + $0x30] sm:$0xff]  ;;  %v592_v43 = vadd.s32 %v591_v42, %v2720_v41  ;;  %s2724_s25 = scalar_lea.vmem [#allocation3], %s2718_s16  ;;  %s2540_s13 = smov 127  }
  0x43   : > { %v2065_v24 = vpack.c.bf16 %v861_v22, %v860_v21  ;;  %v533_v25 = vld [vmem:[%s513_s26 + $0x8] sm:$0xff]  ;;  %v608_v27 = vld [vmem:[%s522_s22 + $0x20] sm:$0xff]  ;;  %v611_v30 = vld [vmem:[%s522_s22 + $0x38] sm:$0xff]  ;;  %s2539_s26 = smov 1   ;;  %s3004_s1 = scalar_lea.vmem [#allocation5], %s2718_s16 }
  0x44   : > { %577 = vperm.xlu0 %2227, %v539_v15   ;;  %567 = vperm.xlu1 %2228, %v537_v16   ;;  %v609_v28 = vld [vmem:[%s522_s22 + $0x28] sm:$0xff]  ;;  %2078 = vst [vmem:[#allocation2 + $0x60] sm:$0xff] %v2060_v23   ;;  %v2704_v32 = vpack.i.bf16 %v611_v30, %v610_v29  ;;  %v606_v33 = vld [vmem:[%s522_s22 + $0x10] sm:$0xff]  ;;  %v607_v34 = vld [vmem:[%s522_s22 + $0x18] sm:$0xff]  ;;  %vm593_vm0 = vcmp.lt.s32.totalorder %v592_v43, 200  ;;  %s1962_s15 = sshll.u32 %s2523_s9, 4 }
  0x45   : > { %2079 = vst [vmem:[#allocation2 + $0x68] sm:$0xff] %v2065_v24   ;;  %v2702_v31 = vpack.i.bf16 %v609_v28, %v608_v27  ;;  %v2708_v35 = vpack.i.bf16 %v607_v34, %v606_v33  ;;  %v604_v36 = vld [vmem:[%s522_s22] sm:$0xff]  ;;  %v605_v37 = vld [vmem:[%s522_s22 + $0x8] sm:$0xff]  ;;  %v528_v47 = vld [vmem:[%s2724_s25 + $0x20] sm:$0xff]  ;;  %s3016_s0 = sadd.s32 %s2519_s30, %s1962_s15  ;;  %s1662_s9 = sshll.u32 %s3004_s1, 4  ;;  %s3024_s9 = int_to_ptr.vmem [resolvable:$true] %s1662_s9 }
  0x46   : > { %v2711_v38 = vpack.i.bf16 %v605_v37, %v604_v36  ;;  %v530_v45 = vld [vmem:[%s2724_s25 + $0x30] sm:$0xff]  ;;  %v531_v48 = vld [vmem:[%s2724_s25 + $0x38] sm:$0xff]  ;;  %v529_v49 = vld [vmem:[%s2724_s25 + $0x28] sm:$0xff]  ;;  %s3148_s30 = sshll.u32 %s3016_s0, 7  ;;  %s3037_s21 = scalar_lea.vmem [#allocation7], %s2718_s16 }
  0x47   : > { %v2731_v56 = vld [vmem:[%s2724_s25 + $0x18] sm:$0xff]  ;;  %v2734_v57 = vld [vmem:[%s2724_s25 + $0x10] sm:$0xff]  ;;  %v2743_v5 = vld [vmem:[%s2724_s25 + $0x8] sm:$0xff]  ;;  %s3033_s14 = scalar_lea.hbm %s3144_s7, %s3148_s30  ;;  %s2413_s18 = scalar_lea.vmem %s3024_s9, 1024 }
  0x48   : > { %557 = vperm.xlu1 %2228, %v535_v17   ;;  %552 = vperm.xlu0 %2227, %v534_v18   ;;  %v2746_v6 = vld [vmem:[%s2724_s25] sm:$0xff]  ;;  %v2784_v28 = vld [vmem:[%s3142_s5 + $0x38] sm:$0xff]  ;;  %v2791_v29 = vld [vmem:[%s3142_s5 + $0x20] sm:$0xff]  ;;  %p2414_p3 = scmp.ne.s32.totalorder %s3024_s9, %s2413_s18  ;;  %s2417_s16 = sshll.u32 %s2541_s23, 4  ;;  %s2418_s16 = int_to_ptr.vmem [resolvable:$false] %s2417_s16 }
  0x49   : > { %v2779_v27 = vld [vmem:[%s3142_s5 + $0x30] sm:$0xff]  ;;  %v929_v33 = vld [vmem:[%s3142_s5 + $0x18] sm:$0xff]  ;;  %v2821_v36 = vld [vmem:[%s3142_s5 + $0x60] sm:$0xff]  ;;  %s2419_s22 = scalar_lea.vmem %s2418_s16, 2048  ;;  %p2420_p6 = scmp.lt.s32.totalorder %s3024_s9, %s2418_s16 }
  0x4a   : > { %v2796_v30 = vld [vmem:[%s3142_s5 + $0x10] sm:$0xff]  ;;  %v2827_v37 = vld [vmem:[%s3142_s5 + $0x78] sm:$0xff]  ;;  %v2844_v42 = vld [vmem:[%s3142_s5 + $0x40] sm:$0xff]  ;;  %p2415_p4 = pnand %p2414_p3, %p2651_p8  ;;  %p2421_p7 = scmp.lt.s32.totalorder %s2419_s22, %s2413_s18 }
  0x4b   : > { %v2812_v34 = vld [vmem:[%s3142_s5 + $0x70] sm:$0xff] }
  0x4c   : > { %547 = vperm.xlu1 %2228, %v533_v25   ;;  %542 = vperm.xlu0 %2227, %v532_v26   ;;  %v2331_v25 = vld [vmem:[%s3141_s4 + $0x4] ss:$8 sps:$4 sm:$0xff]   ;;  %p2416_p5 = pneg %p2415_p4  ;;  %p2422_p10 = por %p2421_p7, %p2420_p6 }
  0x4d   : > { %1928 = vmatprep.mubr.msk.bf16.mxu0 %vm1178_vm1, %v2331_v25  ;;  %v2337_v26 = vld [vmem:[%s3141_s4 + $0x64] ss:$8 sps:$4 sm:$0xff]  }
  0x4e   : > { %1934 = vmatprep.mubr.msk.bf16.mxu1 %vm1178_vm1, %v2337_v26  ;;  %p2423_p11 = pnand %p2422_p10, %p2416_p5 }
  0x50   : > { %2235 = vperm.xlu1 %2228, %v2702_v31   ;;  %2230 = vperm.xlu0 %2227, %v2704_v32  }
  0x54   : > { %2240 = vperm.xlu1 %2228, %v2708_v35   ;;  %2269 = vset.pattern.permute.xlu0 %v2538_v39 }
  0x58   : > { %2245 = vperm.xlu1 %2228, %v2711_v38  }
  0x5c   : > { %2275 = vset.pattern.permute.xlu1 %v2538_v39 }
  0xbb   : > { %v573_v44 = vpop.permute.xlu0 %572  ;;  %v563_v46 = vpop.permute.xlu1 %562 }
  0xbc   : > { %v586_v50 = vadd.f32 %v573_v44, %v530_v45  ;;  %v584_v51 = vadd.f32 %v563_v46, %v528_v47  ;;  %v937_v44 = vld [vmem:[%s3142_s5 + $0x58] sm:$0xff]  ;;  %v935_v46 = vld [vmem:[%s3142_s5 + $0x48] sm:$0xff] }
  0xbe   : > { %v602_v58 = vsel %vm593_vm0, %v586_v50, 0.0  ;;  %v600_v59 = vsel %vm593_vm0, %v584_v51, 0.0 }
  0xbf   : > { %v578_v52 = vpop.permute.xlu0 %577  ;;  %v568_v53 = vpop.permute.xlu1 %567 }
  0xc0   : > { %v587_v54 = vadd.f32 %v578_v52, %v531_v48  ;;  %v585_v55 = vadd.f32 %v568_v53, %v529_v49 }
  0xc2   : > { %v603_v60 = vsel %vm593_vm0, %v587_v54, 0.0  ;;  %v601_v61 = vsel %vm593_vm0, %v585_v55, 0.0 }
  0xc3   : > { %v2035_v62 = vpack.c.bf16 %v603_v60, %v602_v58  ;;  %v2030_v63 = vpack.c.bf16 %v601_v61, %v600_v59  ;;  %v558_v0 = vpop.permute.xlu1 %557  ;;  %v553_v1 = vpop.permute.xlu0 %552  ;;  %v2249_v2 = vpack.i.bf16 %v603_v60, %v602_v58  ;;  %v2254_v13 = vpack.i.bf16 %v601_v61, %v600_v59 }
  0xc4   : > { %v583_v3 = vadd.f32 %v558_v0, %v2731_v56  ;;  %v582_v4 = vadd.f32 %v553_v1, %v2734_v57 }
  0xc5   : > { %2073 = vst [vmem:[#allocation2 + $0x38] sm:$0xff] %v2035_v62   ;;  %2072 = vst [vmem:[#allocation2 + $0x30] sm:$0xff] %v2030_v63   ;;  %2250 = vrot.lane.b32.xlu0 %v2249_v2, %s2539_s26 }
  0xc6   : > { %v599_v7 = vsel %vm593_vm0, %v583_v3, 0.0  ;;  %v598_v8 = vsel %vm593_vm0, %v582_v4, 0.0 }
  0xc7   : > { %v2025_v9 = vpack.c.bf16 %v599_v7, %v598_v8  ;;  %v548_v10 = vpop.permute.xlu1 %547  ;;  %v543_v11 = vpop.permute.xlu0 %542  ;;  %v2259_v19 = vpack.i.bf16 %v599_v7, %v598_v8 }
  0xc8   : > { %v581_v14 = vadd.f32 %v548_v10, %v2743_v5  ;;  %v580_v15 = vadd.f32 %v543_v11, %v2746_v6 }
  0xc9   : > { %2071 = vst [vmem:[#allocation2 + $0x28] sm:$0xff] %v2025_v9   ;;  %2255 = vrot.lane.b32.xlu0 %v2254_v13, %s2539_s26 }
  0xca   : > { %v597_v16 = vsel %vm593_vm0, %v581_v14, 0.0  ;;  %v596_v17 = vsel %vm593_vm0, %v580_v15, 0.0 }
  0xcb   : > { %v2020_v18 = vpack.c.bf16 %v597_v16, %v596_v17  ;;  %v2264_v20 = vpack.i.bf16 %v597_v16, %v596_v17  ;;  %v2236_v43 = vpop.permute.xlu1 %2235  ;;  %v2231_v45 = vpop.permute.xlu0 %2230 }
  0xcc   : > { %v2315_v21 = vld [vmem:[#allocation2 + $0x38] sm:$0xff]   ;;  %v2316_v22 = vld [vmem:[#allocation2 + $0x30] sm:$0xff]   ;;  %v2233_v49 = vunpack.i.h.bf16 %v2231_v45  ;;  %v2232_v50 = vunpack.i.l.bf16 %v2231_v45  ;;  %v2238_v60 = vunpack.i.h.bf16 %v2236_v43  ;;  %v2237_v61 = vunpack.i.l.bf16 %v2236_v43 }
  0xcd   : > { %2070 = vst [vmem:[#allocation2 + $0x20] sm:$0xff] %v2020_v18   ;;  %2260 = vrot.lane.b32.xlu0 %v2259_v19, %s2539_s26  ;;  %2265 = vrot.lane.b32.xlu1 %v2264_v20, %s2539_s26 }
  0xce   : > { %1204 = vmatpush1.bf16.msra.mxu0 %v2315_v21  ;;  %2130 = vmatpush1.bf16.msra.mxu1 %v2315_v21 }
  0xcf   : > { %1205 = vmatprep.subr.bf16.mxu0 %v2537_v12  ;;  %2117 = vmatprep.subr.bf16.mxu1 %v2537_v12  ;;  %v2241_v47 = vpop.permute.xlu1 %2240 }
  0xd0   : > { %v2317_v23 = vld [vmem:[#allocation2 + $0x28] sm:$0xff]   ;;  %v2243_v0 = vunpack.i.h.bf16 %v2241_v47  ;;  %v2242_v3 = vunpack.i.l.bf16 %v2241_v47  ;;  %v2324_v47 = vld [vmem:[#allocation2 + $0x60] sm:$0xff]  }
  0xd1   : > { %2271 = vperm.xlu0 %2269, %v2704_v32   ;;  %2277 = vperm.xlu1 %2275, %v2702_v31   ;;  %v931_v31 = vld [vmem:[%s3142_s5 + $0x28] sm:$0xff]  ;;  %v926_v32 = vld [vmem:[%s3142_s5] sm:$0xff] }
  0xd2   : > { %1206 = vmatpush1.bf16.msra.mxu0 %v2316_v22  ;;  %2131 = vmatpush1.bf16.msra.mxu1 %v2316_v22 }
  0xd3   : > { %1207 = vmatprep.subr.bf16.mxu0 %v2537_v12  ;;  %2118 = vmatprep.subr.bf16.mxu1 %v2537_v12  ;;  %v2246_v55 = vpop.permute.xlu1 %2245 }
  0xd4   : > { %v2318_v24 = vld [vmem:[#allocation2 + $0x20] sm:$0xff]   ;;  %v2248_v4 = vunpack.i.h.bf16 %v2246_v55  ;;  %v2247_v7 = vunpack.i.l.bf16 %v2246_v55 }
  0xd5   : > { %2282 = vperm.xlu0 %2269, %v2708_v35   ;;  %2292 = vrot.lane.b32.xlu1 %v2249_v2, %s2540_s13  ;;  %v927_v35 = vld [vmem:[%s3142_s5 + $0x8] sm:$0xff] }
  0xd6   : > { %1208 = vmatpush1.bf16.msra.mxu0 %v2317_v23  ;;  %2132 = vmatpush1.bf16.msra.mxu1 %v2317_v23 }
  0xd7   : > { %1209 = vmatprep.subr.bf16.mxu0 %v2537_v12  ;;  %2119 = vmatprep.subr.bf16.mxu1 %v2537_v12 }
  0xd8   : > { %2311 = vset.pattern.permute.xlu1 %v2537_v12 }
  0xd9   : > { %2287 = vperm.xlu0 %2269, %v2711_v38   ;;  %2297 = vrot.lane.b32.xlu1 %v2254_v13, %s2540_s13  ;;  %v2832_v38 = vld [vmem:[%s3142_s5 + $0x50] sm:$0xff] }
  0xda   : > { %1210 = vmatpush1.bf16.msra.mxu0 %v2318_v24  ;;  %2133 = vmatpush1.bf16.msra.mxu1 %v2318_v24 }
  0xdb   : > { %1211 = vmatprep.subr.bf16.mxu0 %v2537_v12  ;;  %2120 = vmatprep.subr.bf16.mxu1 %v2537_v12 }
  0xdd   : > { %2307 = vrot.lane.b32.xlu0 %v2264_v20, %s2540_s13  ;;  %2302 = vrot.lane.b32.xlu1 %v2259_v19, %s2540_s13 }
  0xde   : > { %2312 = vset.pattern.permute.xlu0 %v2537_v12 }
  0xe1   : > { %974 = vperm.xlu1 %2311, %v2779_v27   ;;  %979 = vperm.xlu0 %2312, %v2784_v28  }
  0xe5   : > { %964 = vperm.xlu1 %2311, %v2791_v29   ;;  %954 = vperm.xlu0 %2312, %v2796_v30  }
  0xe9   : > { %969 = vperm.xlu1 %2311, %v931_v31   ;;  %944 = vperm.xlu0 %2312, %v926_v32  }
  0xed   : > { %959 = vperm.xlu1 %2311, %v929_v33   ;;  %1014 = vperm.xlu0 %2312, %v2812_v34  }
  0xf1   : > { %949 = vperm.xlu1 %2311, %v927_v35   ;;  %1004 = vperm.xlu0 %2312, %v2821_v36  }
  0xf5   : > { %1019 = vperm.xlu1 %2311, %v2827_v37   ;;  %994 = vperm.xlu0 %2312, %v2832_v38  }
  0xf9   : > { %1009 = vperm.xlu1 %2311, %v2839_v40   ;;  %984 = vperm.xlu0 %2312, %v2844_v42  }
  0xfd   : > { %999 = vperm.xlu1 %2311, %v937_v44   ;;  %2313 = vset.pattern.permute.xlu0 %v2538_v39 }
  0xfe   : > { %1385 = vperm.xlu0 %2313, %v926_v32  }
 0x101   : > { %989 = vperm.xlu1 %2311, %v935_v46  }
 0x102   : > { %1397 = vperm.xlu0 %2313, %v929_v33   ;;  %v2323_v33 = vld [vmem:[#allocation2 + $0x68] sm:$0xff]  }
 0x105   : > { %2314 = vset.pattern.permute.xlu1 %v2538_v39 }
 0x106   : > { %1389 = vperm.xlu1 %2314, %v927_v35   ;;  %1405 = vperm.xlu0 %2313, %v931_v31  }
 0x10a   : > { %1393 = vperm.xlu1 %2314, %v2796_v30   ;;  %1413 = vperm.xlu0 %2313, %v2784_v28  }
 0x10e   : > { %1401 = vperm.xlu1 %2314, %v2791_v29   ;;  %1421 = vperm.xlu0 %2313, %v935_v46  }
 0x112   : > { %1409 = vperm.xlu1 %2314, %v2779_v27   ;;  %1429 = vperm.xlu0 %2313, %v937_v44  }
 0x116   : > { %1417 = vperm.xlu1 %2314, %v2844_v42   ;;  %1437 = vperm.xlu0 %2313, %v2839_v40  }
 0x11a   : > { %1425 = vperm.xlu1 %2314, %v2832_v38   ;;  %1445 = vperm.xlu0 %2313, %v2827_v37  }
 0x11e   : > { %1433 = vperm.xlu1 %2314, %v2821_v36  }
 0x122   : > { %1441 = vperm.xlu1 %2314, %v2812_v34  }
 0x137   : > { %v2251_v48 = vpop.permute.xlu0 %2250 }
 0x138   : > { %v2253_v51 = vunpack.i.h.bf16 %v2251_v48  ;;  %v2252_v52 = vunpack.i.l.bf16 %v2251_v48 }
 0x13a   : > { %v678_v53 = vsel %vm612_vm2, %v2233_v49, %v2253_v51  ;;  %v677_v54 = vsel %vm612_vm2, %v2232_v50, %v2252_v52 }
 0x13b   : > { %v2015_v58 = vpack.c.bf16 %v678_v53, %v677_v54  ;;  %v2256_v59 = vpop.permute.xlu0 %2255 }
 0x13c   : > { %v2258_v62 = vunpack.i.h.bf16 %v2256_v59  ;;  %v2257_v63 = vunpack.i.l.bf16 %v2256_v59 }
 0x13d   : > { %2069 = vst [vmem:[#allocation2 + $0x18] sm:$0xff] %v2015_v58  }
 0x13e   : > { %v676_v1 = vsel %vm612_vm2, %v2238_v60, %v2258_v62  ;;  %v675_v2 = vsel %vm612_vm2, %v2237_v61, %v2257_v63 }
 0x13f   : > { %v2010_v8 = vpack.c.bf16 %v676_v1, %v675_v2  ;;  %v2261_v9 = vpop.permute.xlu0 %2260  ;;  %v2266_v39 = vpop.permute.xlu1 %2265 }
 0x140   : > { %v2263_v10 = vunpack.i.h.bf16 %v2261_v9  ;;  %v2262_v11 = vunpack.i.l.bf16 %v2261_v9  ;;  %v2268_v13 = vunpack.i.h.bf16 %v2266_v39  ;;  %v2267_v14 = vunpack.i.l.bf16 %v2266_v39  ;;  %v2335_v9 = vld [vmem:[%s3141_s4 + $0x60] ss:$8 sps:$4 sm:$0xff]   ;;  %v2332_v39 = vld [vmem:[%s3141_s4 + $0x14] ss:$8 sps:$4 sm:$0xff]  }
 0x141   : > { %2068 = vst [vmem:[#allocation2 + $0x10] sm:$0xff] %v2010_v8   ;;  %v2329_v8 = vld [vmem:[%s3141_s4] ss:$8 sps:$4 sm:$0xff]  }
 0x142   : > { %v674_v15 = vsel %vm612_vm2, %v2243_v0, %v2263_v10  ;;  %v673_v16 = vsel %vm612_vm2, %v2242_v3, %v2262_v11  ;;  %v672_v17 = vsel %vm612_vm2, %v2248_v4, %v2268_v13  ;;  %v671_v18 = vsel %vm612_vm2, %v2247_v7, %v2267_v14  ;;  %v2341_v10 = vld [vmem:[%s3141_s4 + $0x74] ss:$8 sps:$4 sm:$0xff]   ;;  %v2343_v11 = vld [vmem:[%s3141_s4 + $0x70] ss:$8 sps:$4 sm:$0xff]   ;;  %v2338_v13 = vld [vmem:[%s3141_s4 + $0x24] ss:$8 sps:$4 sm:$0xff]  }
 0x143   : > { %v2005_v19 = vpack.c.bf16 %v674_v15, %v673_v16  ;;  %v2000_v20 = vpack.c.bf16 %v672_v17, %v671_v18  ;;  %v2340_v14 = vld [vmem:[%s3141_s4 + $0x20] ss:$8 sps:$4 sm:$0xff]   ;;  %v2344_v15 = vld [vmem:[%s3141_s4 + $0x34] ss:$8 sps:$4 sm:$0xff]   ;;  %v2346_v16 = vld [vmem:[%s3141_s4 + $0x30] ss:$8 sps:$4 sm:$0xff]  }
 0x144   : > { %v2319_v21 = vld [vmem:[#allocation2 + $0x18] sm:$0xff]   ;;  %v2347_v17 = vld [vmem:[%s3141_s4 + $0x44] ss:$8 sps:$4 sm:$0xff]   ;;  %v2349_v18 = vld [vmem:[%s3141_s4 + $0x40] ss:$8 sps:$4 sm:$0xff]  }
 0x145   : > { %2067 = vst [vmem:[#allocation2 + $0x8] sm:$0xff] %v2005_v19   ;;  %2001 = vst [vmem:[#allocation2] sm:$0xff] %v2000_v20   ;;  %1212 = vmatpush1.bf16.msra.mxu0 %v2319_v21  ;;  %2134 = vmatpush1.bf16.msra.mxu1 %v2319_v21  ;;  %v2350_v19 = vld [vmem:[%s3141_s4 + $0x54] ss:$8 sps:$4 sm:$0xff]   ;;  %v2352_v20 = vld [vmem:[%s3141_s4 + $0x50] ss:$8 sps:$4 sm:$0xff]  }
 0x146   : > { %1213 = vmatprep.subr.bf16.mxu0 %v2537_v12  ;;  %2121 = vmatprep.subr.bf16.mxu1 %v2537_v12  ;;  %v2353_v21 = vld [vmem:[%s3143_s6] sm:$0xff]  }
 0x148   : > { %v2320_v22 = vld [vmem:[#allocation2 + $0x10] sm:$0xff]  }
 0x149   : > { %1214 = vmatpush1.bf16.msra.mxu0 %v2320_v22  ;;  %2135 = vmatpush1.bf16.msra.mxu1 %v2320_v22 }
 0x14a   : > { %1215 = vmatprep.subr.bf16.mxu0 %v2537_v12  ;;  %2122 = vmatprep.subr.bf16.mxu1 %v2537_v12 }
 0x14c   : > { %v2272_v23 = vpop.permute.xlu0 %2271  ;;  %v2278_v24 = vpop.permute.xlu1 %2277  ;;  %v2321_v25 = vld [vmem:[#allocation2 + $0x8] sm:$0xff]   ;;  %v2322_v30 = vld [vmem:[#allocation2] sm:$0xff]  }
 0x14d   : > { %1216 = vmatpush1.bf16.msra.mxu0 %v2321_v25  ;;  %2136 = vmatpush1.bf16.msra.mxu1 %v2321_v25  ;;  %v2274_v26 = vunpack.i.h.bf16 %v2272_v23  ;;  %v2273_v28 = vunpack.i.l.bf16 %v2272_v23  ;;  %v2280_v37 = vunpack.i.h.bf16 %v2278_v24  ;;  %v2279_v44 = vunpack.i.l.bf16 %v2278_v24 }
 0x14e   : > { %1217 = vmatprep.subr.bf16.mxu0 %v2537_v12  ;;  %2123 = vmatprep.subr.bf16.mxu1 %v2537_v12 }
 0x150   : > { %v2283_v27 = vpop.permute.xlu0 %2282  ;;  %v2293_v29 = vpop.permute.xlu1 %2292 }
 0x151   : > { %v2295_v31 = vunpack.i.h.bf16 %v2293_v29  ;;  %v2294_v32 = vunpack.i.l.bf16 %v2293_v29  ;;  %1218 = vmatpush1.bf16.msra.mxu0 %v2322_v30  ;;  %2137 = vmatpush1.bf16.msra.mxu1 %v2322_v30  ;;  %v2285_v48 = vunpack.i.h.bf16 %v2283_v27  ;;  %v2284_v36 = vunpack.i.l.bf16 %v2283_v27 }
 0x152   : > { %1223 = vmatprep.subr.bf16.mxu0 %v2537_v12  ;;  %2124 = vmatprep.subr.bf16.mxu1 %v2537_v12 }
 0x153   : > { %v737_v35 = vsel %vm679_vm3, %v2274_v26, %v2295_v31  ;;  %v736_v40 = vsel %vm679_vm3, %v2273_v28, %v2294_v32 }
 0x154   : > { %v2055_v42 = vpack.c.bf16 %v737_v35, %v736_v40  ;;  %v2288_v43 = vpop.permute.xlu0 %2287  ;;  %v2298_v38 = vpop.permute.xlu1 %2297 }
 0x155   : > { %v2300_v45 = vunpack.i.h.bf16 %v2298_v38  ;;  %v2299_v46 = vunpack.i.l.bf16 %v2298_v38  ;;  %1224 = vmatpush2.bf16.msra.mxu0 %v2323_v33  ;;  %2138 = vmatpush2.bf16.msra.mxu1 %v2323_v33  ;;  %v2290_v51 = vunpack.i.h.bf16 %v2288_v43  ;;  %v2289_v52 = vunpack.i.l.bf16 %v2288_v43 }
 0x156   : > { %2077 = vst [vmem:[#allocation2 + $0x58] sm:$0xff] %v2055_v42   ;;  %1225 = vmatprep.subr.bf16.mxu0 %v2537_v12  ;;  %2125 = vmatprep.subr.bf16.mxu1 %v2537_v12 }
 0x157   : > { %v734_v49 = vsel %vm679_vm3, %v2279_v44, %v2299_v46  ;;  %v735_v50 = vsel %vm679_vm3, %v2280_v37, %v2300_v45 }
 0x158   : > { %v2050_v53 = vpack.c.bf16 %v735_v50, %v734_v49  ;;  %v2308_v54 = vpop.permute.xlu0 %2307  ;;  %v2303_v55 = vpop.permute.xlu1 %2302 }
 0x159   : > { %v2310_v58 = vunpack.i.h.bf16 %v2308_v54  ;;  %v2309_v59 = vunpack.i.l.bf16 %v2308_v54  ;;  %v2305_v60 = vunpack.i.h.bf16 %v2303_v55  ;;  %v2304_v61 = vunpack.i.l.bf16 %v2303_v55  ;;  %1226 = vmatpush2.bf16.msra.mxu0 %v2324_v47  ;;  %2139 = vmatpush2.bf16.msra.mxu1 %v2324_v47 }
 0x15a   : > { %2076 = vst [vmem:[#allocation2 + $0x50] sm:$0xff] %v2050_v53   ;;  %1227 = vmatprep.subr.bf16.mxu0 %v2537_v12  ;;  %2126 = vmatprep.subr.bf16.mxu1 %v2537_v12 }
 0x15b   : > { %v731_v62 = vsel %vm679_vm3, %v2290_v51, %v2310_v58  ;;  %v730_v63 = vsel %vm679_vm3, %v2289_v52, %v2309_v59  ;;  %v733_v0 = vsel %vm679_vm3, %v2285_v48, %v2305_v60  ;;  %v732_v1 = vsel %vm679_vm3, %v2284_v36, %v2304_v61 }
 0x15c   : > { %v2040_v34 = vpack.c.bf16 %v731_v62, %v730_v63  ;;  %v2045_v2 = vpack.c.bf16 %v733_v0, %v732_v1  ;;  %v975_v24 = vpop.permute.xlu1 %974  ;;  %v980_v46 = vpop.permute.xlu0 %979 }
 0x15d   : > { %v2325_v3 = vld [vmem:[#allocation2 + $0x58] sm:$0xff]  }
 0x15e   : > { %2074 = vst [vmem:[#allocation2 + $0x40] sm:$0xff] %v2040_v34   ;;  %2075 = vst [vmem:[#allocation2 + $0x48] sm:$0xff] %v2045_v2   ;;  %1228 = vmatpush2.bf16.msra.mxu0 %v2325_v3  ;;  %2140 = vmatpush2.bf16.msra.mxu1 %v2325_v3 }
 0x15f   : > { %1229 = vmatprep.subr.bf16.mxu0 %v2537_v12  ;;  %2127 = vmatprep.subr.bf16.mxu1 %v2537_v12 }
 0x160   : > { %v965_v31 = vpop.permute.xlu1 %964  ;;  %v955_v52 = vpop.permute.xlu0 %954 }
 0x161   : > { %v2326_v4 = vld [vmem:[#allocation2 + $0x50] sm:$0xff]  }
 0x162   : > { %1230 = vmatpush2.bf16.msra.mxu0 %v2326_v4  ;;  %2141 = vmatpush2.bf16.msra.mxu1 %v2326_v4 }
 0x163   : > { %1231 = vmatprep.subr.bf16.mxu0 %v2537_v12  ;;  %2128 = vmatprep.subr.bf16.mxu1 %v2537_v12 }
 0x164   : > { %v970_v38 = vpop.permute.xlu1 %969  ;;  %v945_v1 = vpop.permute.xlu0 %944 }
 0x165   : > { %v2327_v41 = vld [vmem:[#allocation2 + $0x48] sm:$0xff]   ;;  %v2328_v7 = vld [vmem:[#allocation2 + $0x40] sm:$0xff]  }
 0x166   : > { %1232 = vmatpush2.bf16.msra.mxu0 %v2327_v41  ;;  %2142 = vmatpush2.bf16.msra.mxu1 %v2327_v41 }
 0x167   : > { %1233 = vmatprep.subr.bf16.mxu0 %v2537_v12  ;;  %2129 = vmatprep.subr.bf16.mxu1 %v2537_v12  ;;  %v2334_v12 = vld [vmem:[%s3141_s4 + $0x10] ss:$8 sps:$4 sm:$0xff]  }
 0x168   : > { %v960_v48 = vpop.permute.xlu1 %959 }
 0x16a   : > { %1234 = vmatpush2.bf16.msra.mxu0 %v2328_v7  ;;  %2143 = vmatpush2.bf16.msra.mxu1 %v2328_v7 }
 0x16c   : > { %v950_v60 = vpop.permute.xlu1 %949 }
 0x16d   : > { %1236 = vmatmul.mubr.bf16.vlgmr.msra.gmra.mxu0 %v2329_v8  ;;  %1284 = vmatmul.mubr.bf16.vlgmr.msra.gmra.mxu1 %v2335_v9 }
 0x16e   : > { %1929 = vmatprep.mubr.msk.bf16.mxu0 %vm1178_vm1, %v2332_v39  ;;  %1935 = vmatprep.mubr.msk.bf16.mxu1 %vm1178_vm1, %v2341_v10 }
 0x170   : > { %v1020_v10 = vpop.permute.xlu1 %1019 }
 0x175   : > { %1244 = vmatmul.mubr.bf16.gmra.mxu0 %v2334_v12  ;;  %1292 = vmatmul.mubr.bf16.gmra.mxu1 %v2343_v11  ;;  %v1015_v11 = vpop.permute.xlu0 %1014 }
 0x176   : > { %1930 = vmatprep.mubr.msk.bf16.mxu0 %vm1178_vm1, %v2338_v13  ;;  %2100 = vmatprep.mubr.msk.bf16.mxu1 %vm1488_vm4, %v2353_v21 }
 0x17d   : > { %1252 = vmatmul.mubr.bf16.gmra.mxu0 %v2340_v14 }
 0x17e   : > { %1931 = vmatprep.mubr.msk.bf16.mxu0 %vm1178_vm1, %v2344_v15 }
 0x185   : > { %1260 = vmatmul.mubr.bf16.gmra.mxu0 %v2346_v16  ;;  %v1010_v16 = vpop.permute.xlu1 %1009 }
 0x186   : > { %1932 = vmatprep.mubr.msk.bf16.mxu0 %vm1178_vm1, %v2347_v17 }
 0x18d   : > { %1268 = vmatmul.mubr.bf16.gmra.mxu0 %v2349_v18 }
 0x18e   : > { %1933 = vmatprep.mubr.msk.bf16.mxu0 %vm1178_vm1, %v2350_v19 }
 0x195   : > { %1276 = vmatmul.mubr.bf16.gmra.mxu0 %v2352_v20  ;;  %v1005_v20 = vpop.permute.xlu0 %1004 }
 0x22d   : > { %v1237_v22 = vpop.f32.mrf.mxu0  ;;  %v2970_v23 = vpop.f32.mrf.mxu1 }
 0x22e   : > { %v1238_v8 = vadd.f32 %v1237_v22, %v945_v1 }
 0x22f   : > { %v1239_v25 = vpop.f32.mrf.mxu0  ;;  %v1287_v26 = vpop.f32.mrf.mxu1 }
 0x230   : > { %v1936_v13 = vmul.f32 -1.442695, %v1238_v8 }
 0x231   : > { %v1240_v28 = vpop.f32.mrf.mxu0  ;;  %v1288_v27 = vpop.f32.mrf.mxu1 }
 0x232   : > { %v1241_v34 = vadd.f32 %v1240_v28, %v950_v60  ;;  %v1289_v18 = vadd.f32 %v1288_v27, %v1010_v16  ;;  %v1286_v27 = vadd.f32 %v2970_v23, %v1005_v20  ;;  %v2356_v20 = vld [vmem:[%s3143_s6 + $0x18] sm:$0xff]  }
 0x233   : > { %v1242_v29 = vpop.f32.mrf.mxu0  ;;  %v1290_v30 = vpop.f32.mrf.mxu1 }
 0x234   : > { %v1937_v39 = vmul.f32 -1.442695, %v1241_v34 }
 0x235   : > { %v1245_v32 = vpop.f32.mrf.mxu0  ;;  %v1293_v33 = vpop.f32.mrf.mxu1 }
 0x236   : > { %v1246_v62 = vadd.f32 %v1245_v32, %v955_v52  ;;  %v1294_v21 = vadd.f32 %v1293_v33, %v1015_v11  ;;  %v1000_v32 = vpop.permute.xlu1 %999 }
 0x237   : > { %v1247_v35 = vpop.f32.mrf.mxu0  ;;  %v1295_v40 = vpop.f32.mrf.mxu1 }
 0x238   : > { %v1938_v41 = vmul.f32 -1.442695, %v1246_v62 }
 0x239   : > { %v1248_v42 = vpop.f32.mrf.mxu0  ;;  %v1296_v43 = vpop.f32.mrf.mxu1 }
 0x23a   : > { %v1249_v55 = vadd.f32 %v1248_v42, %v960_v48  ;;  %v990_v48 = vpop.permute.xlu1 %989 }
 0x23b   : > { %v1250_v37 = vpop.f32.mrf.mxu0  ;;  %v1298_v44 = vpop.f32.mrf.mxu1 }
 0x23c   : > { %v1939_v2 = vmul.f32 -1.442695, %v1249_v55 }
 0x23d   : > { %v1253_v45 = vpop.f32.mrf.mxu0 }
 0x23e   : > { %v1254_v50 = vadd.f32 %v1253_v45, %v965_v31 }
 0x23f   : > { %v1255_v47 = vpop.f32.mrf.mxu0 }
 0x240   : > { %v1940_v58 = vmul.f32 -1.442695, %v1254_v50 }
 0x241   : > { %v1256_v49 = vpop.f32.mrf.mxu0 }
 0x242   : > { %v1257_v36 = vadd.f32 %v1256_v49, %v970_v38  ;;  %v995_v38 = vpop.permute.xlu0 %994 }
 0x243   : > { %v1258_v51 = vpop.f32.mrf.mxu0 }
 0x244   : > { %v1941_v53 = vmul.f32 -1.442695, %v1257_v36 }
 0x245   : > { %v1261_v54 = vpop.f32.mrf.mxu0 }
 0x246   : > { %v1262_v59 = vadd.f32 %v1261_v54, %v975_v24  ;;  %2361 = vpow2.f32 %v1941_v53  ;;  %v1297_v24 = vadd.f32 %v1296_v43, %v1020_v10  ;;  %v985_v23 = vpop.permute.xlu0 %984 }
 0x247   : > { %v1263_v61 = vpop.f32.mrf.mxu0  ;;  %2363 = vpow2.f32 %v1940_v58 }
 0x248   : > { %v1942_v63 = vmul.f32 -1.442695, %v1262_v59 }
 0x249   : > { %v1264_v0 = vpop.f32.mrf.mxu0 }
 0x24a   : > { %v1265_v3 = vadd.f32 %v1264_v0, %v980_v46  ;;  %2365 = vpow2.f32 %v1942_v63 }
 0x24b   : > { %v1266_v4 = vpop.f32.mrf.mxu0  ;;  %2367 = vpow2.f32 %v1939_v2 }
 0x24c   : > { %v1943_v7 = vmul.f32 -1.442695, %v1265_v3 }
 0x24d   : > { %v1269_v9 = vpop.f32.mrf.mxu0 }
 0x24e   : > { %2369 = vpow2.f32 %v1943_v7  ;;  %v1270_v51 = vadd.f32 %v1269_v9, %v985_v23 }
 0x24f   : > { %v1271_v12 = vpop.f32.mrf.mxu0  ;;  %2371 = vpow2.f32 %v1938_v41 }
 0x250   : > { %2373 = vpow2.f32 %v1937_v39 }
 0x251   : > { %v1272_v14 = vpop.f32.mrf.mxu0  ;;  %2375 = vpow2.f32 %v1936_v13 }
 0x252   : > { %2377 = vtanh.f32 %v1289_v18  ;;  %v1273_v49 = vadd.f32 %v1272_v14, %v990_v48  ;;  %v2354_v18 = vld [vmem:[%s3143_s6 + $0x8] sm:$0xff]  }
 0x253   : > { %v1274_v15 = vpop.f32.mrf.mxu0  ;;  %v2362_v17 = vpop.eup %2361  ;;  %2379 = vtanh.f32 %v1294_v21  ;;  %v2357_v21 = vld [vmem:[%s3143_s6 + $0x20] sm:$0xff]  }
 0x254   : > { %v2364_v22 = vpop.eup %2363  ;;  %v1329_v28 = vadd.f32 1.0, %v2362_v17  ;;  %2381 = vtanh.f32 %v1297_v24  ;;  %v2359_v24 = vld [vmem:[%s3143_s6 + $0x30] sm:$0xff]  }
 0x255   : > { %v1277_v19 = vpop.f32.mrf.mxu0  ;;  %v1328_v31 = vadd.f32 1.0, %v2364_v22  ;;  %v2358_v22 = vld [vmem:[%s3143_s6 + $0x28] sm:$0xff]  }
 0x256   : > { %2383 = vrcp.f32 %v1329_v28  ;;  %v1278_v46 = vadd.f32 %v1277_v19, %v995_v38  ;;  %v2355_v19 = vld [vmem:[%s3143_s6 + $0x10] sm:$0xff]   ;;  %v1386_v28 = vpop.permute.xlu0 %1385 }
 0x257   : > { %v1279_v25 = vpop.f32.mrf.mxu0  ;;  %v2366_v26 = vpop.eup %2365 }
 0x258   : > { %v1330_v29 = vadd.f32 1.0, %v2366_v26  ;;  %v2368_v35 = vpop.eup %2367  ;;  %v2360_v25 = vld [vmem:[%s3143_s6 + $0x38] sm:$0xff]   ;;  %v1390_v26 = vpop.permute.xlu1 %1389 }
 0x259   : > { %v1280_v30 = vpop.f32.mrf.mxu0  ;;  %v1327_v44 = vadd.f32 1.0, %v2368_v35 }
 0x25a   : > { %2385 = vrcp.f32 %v1330_v29  ;;  %v1281_v37 = vadd.f32 %v1280_v30, %v1000_v32  ;;  %v1398_v30 = vpop.permute.xlu0 %1397 }
 0x25b   : > { %v1282_v40 = vpop.f32.mrf.mxu0  ;;  %v2370_v42 = vpop.eup %2369  ;;  %2387 = vrcp.f32 %v1328_v31 }
 0x25c   : > { %v2372_v33 = vpop.eup %2371  ;;  %v1331_v43 = vadd.f32 1.0, %v2370_v42  ;;  %v1394_v29 = vpop.permute.xlu1 %1393 }
 0x25d   : > { %v2374_v45 = vpop.eup %2373  ;;  %v1326_v47 = vadd.f32 1.0, %v2372_v33 }
 0x25e   : > { %2389 = vrcp.f32 %v1331_v43  ;;  %v2376_v50 = vpop.eup %2375  ;;  %v1325_v36 = vadd.f32 1.0, %v2374_v45  ;;  %v1406_v32 = vpop.permute.xlu0 %1405 }
 0x25f   : > { %2391 = vtanh.f32 %v1286_v27  ;;  %v1324_v52 = vadd.f32 1.0, %v2376_v50  ;;  %v2378_v53 = vpop.eup %2377 }
 0x260   : > { %2393 = vtanh.f32 %v1281_v37  ;;  %v2380_v54 = vpop.eup %2379  ;;  %v1402_v31 = vpop.permute.xlu1 %1401 }
 0x261   : > { %2395 = vrcp.f32 %v1327_v44  ;;  %v2382_v55 = vpop.eup %2381 }
 0x262   : > { %2397 = vtanh.f32 %v1278_v46  ;;  %v1414_v43 = vpop.permute.xlu0 %1413 }
 0x263   : > { %2399 = vrcp.f32 %v1326_v47  ;;  %v2384_v58 = vpop.eup %2383 }
 0x264   : > { %2401 = vtanh.f32 %v1273_v49  ;;  %v1361_v1 = vmul.f32 %v2384_v58, %v2378_v53  ;;  %v1410_v35 = vpop.permute.xlu1 %1409 }
 0x265   : > { %2403 = vrcp.f32 %v1325_v36 }
 0x266   : > { %2405 = vtanh.f32 %v1270_v51 }
 0x267   : > { %2407 = vrcp.f32 %v1324_v52  ;;  %v2386_v59 = vpop.eup %2385  ;;  %v3011_v52 = vpop.permute.xlu0 %1421 }
 0x268   : > { %v2388_v60 = vpop.eup %2387  ;;  %v1362_v63 = vmul.f32 %v2386_v59, %v2380_v54  ;;  %v1418_v47 = vpop.permute.xlu1 %1417 }
 0x26b   : > { %v2390_v61 = vpop.eup %2389 }
 0x26c   : > { %v2392_v62 = vpop.eup %2391  ;;  %v1363_v0 = vmul.f32 %v2390_v61, %v2382_v55  ;;  %v1426_v59 = vpop.permute.xlu1 %1425  ;;  %v2410_v61 = vld [vmem:[%s2724_s25 + $0x20] sm:$0xff] }
 0x26d   : > { %v2394_v34 = vpop.eup %2393  ;;  %v1360_v4 = vmul.f32 %v2392_v62, %v2388_v60 }
 0x26e   : > { %v2396_v2 = vpop.eup %2395  ;;  %v1367_v3 = vpack.c.bf16 %v1363_v0, %v1362_v63 }
 0x26f   : > { %v2398_v41 = vpop.eup %2397  ;;  %v1366_v8 = vpack.c.bf16 %v1361_v1, %v1360_v4  ;;  %v1359_v9 = vmul.f32 %v2396_v2, %v2394_v34  ;;  %v2411_v34 = vld [vmem:[%s2724_s25 + $0x38] sm:$0xff]  ;;  %v1430_v4 = vpop.permute.xlu0 %1429 }
 0x270   : > { %v2400_v7 = vpop.eup %2399  ;;  %2092 = vmatprep.subr.bf16.mxu1 %v1367_v3 }
 0x271   : > { %v2402_v39 = vpop.eup %2401  ;;  %2093 = vmatpush3.bf16.msra.mxu1 %v1367_v3  ;;  %v1358_v12 = vmul.f32 %v2400_v7, %v2398_v41 }
 0x272   : > { %v2404_v10 = vpop.eup %2403  ;;  %2094 = vmatprep.subr.bf16.mxu1 %v1366_v8 }
 0x273   : > { %v2406_v11 = vpop.eup %2405  ;;  %v1365_v13 = vpack.c.bf16 %v1359_v9, %v1358_v12  ;;  %v1357_v14 = vmul.f32 %v2404_v10, %v2402_v39  ;;  %v1434_v10 = vpop.permute.xlu1 %1433 }
 0x274   : > { %v2408_v15 = vpop.eup %2407 }
 0x275   : > { %2095 = vmatpush3.bf16.msra.mxu1 %v1366_v8  ;;  %v1356_v16 = vmul.f32 %v2408_v15, %v2406_v11  ;;  %v2412_v8 = vld [vmem:[%s2724_s25 + $0x28] sm:$0xff] }
 0x276   : > { %2096 = vmatprep.subr.bf16.mxu1 %v1365_v13 }
 0x277   : > { %v1364_v17 = vpack.c.bf16 %v1357_v14, %v1356_v16  ;;  %v1438_v16 = vpop.permute.xlu0 %1437 }
 0x279   : > { %2097 = vmatpush3.bf16.msra.mxu1 %v1365_v13 }
 0x27a   : > { %2098 = vmatprep.subr.bf16.mxu1 %v1364_v17 }
 0x27d   : > { %2099 = vmatpush3.bf16.msra.mxu1 %v1364_v17 }
 0x280   : > { %2101 = vmatmul.mubr.msk.bf16.vlgmr.msra.gmra.mxu1 %vm1488_vm4, %v2354_v18 }
 0x281   : > { %2104 = vmatprep.mubr.msk.bf16.mxu1 %vm1488_vm4, %v2355_v19 }
 0x288   : > { %2105 = vmatmul.mubr.msk.bf16.gmra.mxu1 %vm1488_vm4, %v2356_v20 }
 0x289   : > { %2108 = vmatprep.mubr.msk.bf16.mxu1 %vm1488_vm4, %v2357_v21 }
 0x290   : > { %2109 = vmatmul.mubr.msk.bf16.gmra.mxu1 %vm1488_vm4, %v2358_v22 }
 0x291   : > { %2112 = vmatprep.mubr.msk.bf16.mxu1 %vm1488_vm4, %v2359_v24 }
 0x298   : > { %2113 = vmatmul.mubr.msk.bf16.gmra.mxu1 %vm1488_vm4, %v2360_v25 }
 0x340   : > { %v2102_v40 = vpop.f32.mrf.mxu1 }
 0x341   : > { %v1556_v42 = vadd.f32 %v2102_v40, %v1394_v29 }
 0x342   : > { %v1547_v27 = vpop.f32.mrf.mxu1 }
 0x343   : > { %v1612_v38 = vadd.f32 %v1556_v42, %v2734_v57  ;;  %v1548_v33 = vadd.f32 %v1547_v27, %v1386_v28 }
 0x344   : > { %v2103_v37 = vpop.f32.mrf.mxu1 }
 0x345   : > { %v1620_v44 = vmul.f32 0.70710677, %v1612_v38  ;;  %v1610_v45 = vadd.f32 %v1548_v33, %v2746_v6  ;;  %v1559_v46 = vadd.f32 %v2103_v37, %v1398_v30 }
 0x346   : > { %v1550_v48 = vpop.f32.mrf.mxu1 }
 0x347   : > { %1628 = vst [vmem:[%s3004_s1 + $0x10] sm:$0xff] %v1620_v44  ;;  %v1618_v49 = vmul.f32 0.70710677, %v1610_v45  ;;  %v1613_v57 = vadd.f32 %v1559_v46, %v2731_v56  ;;  %v1551_v50 = vadd.f32 %v1550_v48, %v1390_v26  ;;  %v2409_v56 = vld [vmem:[%s2724_s25 + $0x30] sm:$0xff]  ;;  %s1643_s25 = scalar_lea.sflag [#allocation6], %s2696_s17 }
 0x348   : > { %v2106_v36 = vpop.f32.mrf.mxu1 }
 0x349   : > { %1626 = vst [vmem:[%s3004_s1] sm:$0xff] %v1618_v49  ;;  %v1621_v23 = vmul.f32 0.70710677, %v1613_v57  ;;  %v1611_v6 = vadd.f32 %v1551_v50, %v2743_v5  ;;  %v1572_v51 = vadd.f32 %v2106_v36, %v1410_v35 }
 0x34a   : > { %v1563_v53 = vpop.f32.mrf.mxu1 }
 0x34b   : > { %1629 = vst [vmem:[%s3004_s1 + $0x18] sm:$0xff] %v1621_v23  ;;  %v1619_v54 = vmul.f32 0.70710677, %v1611_v6  ;;  %v1616_v55 = vadd.f32 %v2409_v56, %v1572_v51  ;;  %v1564_v58 = vadd.f32 %v1563_v53, %v1402_v31 }
 0x34c   : > { %v2107_v60 = vpop.f32.mrf.mxu1 }
 0x34d   : > { %1627 = vst [vmem:[%s3004_s1 + $0x8] sm:$0xff] %v1619_v54  ;;  %v1624_v5 = vmul.f32 0.70710677, %v1616_v55  ;;  %v1614_v62 = vadd.f32 %v2410_v61, %v1564_v58  ;;  %v1575_v63 = vadd.f32 %v2107_v60, %v1414_v43 }
 0x34e   : > { %v1566_v0 = vpop.f32.mrf.mxu1 }
 0x34f   : > { %1632 = vst [vmem:[%s3004_s1 + $0x30] sm:$0xff] %v1624_v5  ;;  %v1622_v1 = vmul.f32 0.70710677, %v1614_v62  ;;  %v1617_v2 = vadd.f32 %v2411_v34, %v1575_v63  ;;  %v1567_v3 = vadd.f32 %v1566_v0, %v1406_v32 }
 0x350   : > { %v2110_v41 = vpop.f32.mrf.mxu1 }
 0x351   : > { %1630 = vst [vmem:[%s3004_s1 + $0x20] sm:$0xff] %v1622_v1  ;;  %v1625_v7 = vmul.f32 0.70710677, %v1617_v2  ;;  %v1615_v9 = vadd.f32 %v2412_v8, %v1567_v3  ;;  %v1588_v39 = vadd.f32 %v2110_v41, %v1426_v59 }
 0x352   : > { %v1579_v12 = vpop.f32.mrf.mxu1 }
 0x353   : > { %1633 = vst [vmem:[%s3004_s1 + $0x38] sm:$0xff] %v1625_v7  ;;  %v1623_v11 = vmul.f32 0.70710677, %v1615_v9  ;;  %1636 = vst [vmem:[%s3037_s21 + $0x10] sm:$0xff] %v1588_v39  ;;  %v1580_v13 = vadd.f32 %v1579_v12, %v1418_v47 }
 0x354   : > { %v2111_v14 = vpop.f32.mrf.mxu1 }
 0x355   : > { %1631 = vst [vmem:[%s3004_s1 + $0x28] sm:$0xff] %v1623_v11  ;;  %1634 = vst [vmem:[%s3037_s21] sm:$0xff] %v1580_v13  ;;  %v1591_v15 = vadd.f32 %v2111_v14, %v1430_v4 }
 0x356   : > { %v1582_v17 = vpop.f32.mrf.mxu1 }
 0x357   : > { %2426 = shalt.err (!%p2423_p11)
}
 0x358   : > { %s2427_s1 = scalar_lea.hbm %s3033_s14, 1024  ;;  %s2431_s13 = scalar_lea.hbm %s3144_s7, 4096 }
 0x359   : > { %p2428_p12 = scmp.ne.s32.totalorder %s3033_s14, %s2427_s1  ;;  %p2432_p1 = scmp.lt.s32.totalorder %s3033_s14, %s3144_s7 }
 0x35a   : > { %p2433_p2 = scmp.lt.s32.totalorder %s2431_s13, %s2427_s1 }
 0x35b   : > { %p2429_p13 = pnand %p2428_p12, %p2651_p8 }
 0x35c   : > { %p2434_p3 = por %p2433_p2, %p2432_p1 }
 0x35d   : > { %p2430_p0 = pneg %p2429_p13 }
 0x35f   : > { %p2435_p4 = pnand %p2434_p3, %p2430_p0 }
 0x361   : > { %2438 = shalt.err (!%p2435_p4)
}
 0x362   : > { %s3149_s18 = smov 128   ;;  %s2543_s16 = smov 256   ;;  %1637 = vst [vmem:[%s3037_s21 + $0x18] sm:$0xff] %v1591_v15  ;;  %v1583_v18 = vadd.f32 %v1582_v17, %v3011_v52  ;;  %v1442_v19 = vpop.permute.xlu1 %1441  ;;  %v2114_v20 = vpop.f32.mrf.mxu1 }
 0x363   : > { %s2544_s22 = smov 8   ;;  %v1604_v21 = vadd.f32 %v2114_v20, %v1442_v19  ;;  %s1679_s30 = sshll.u32 %s3037_s21, 4  ;;  %v1446_v25 = vpop.permute.xlu0 %1445  ;;  %s3074_s30 = int_to_ptr.vmem [resolvable:$true] %s1679_s30 }
 0x364   : > { %2144 = dma.vmem_to_hbm [thread:$0]  (%p2651_p8), %s3024_s9, 1024, %s3033_s14, %s1643_s25, %s3149_s18, %s2543_s16, %s2544_s22   ;;  %v1595_v22 = vpop.f32.mrf.mxu1 }
 0x365   : > { %1635 = vst [vmem:[%s3037_s21 + $0x8] sm:$0xff] %v1583_v18  ;;  %1640 = vst [vmem:[%s3037_s21 + $0x30] sm:$0xff] %v1604_v21  ;;  %v1596_v24 = vadd.f32 %v1595_v22, %v1434_v10  ;;  %s3159_s9 = sshll.u32 %s3016_s0, 7  ;;  %s1648_s15 = scalar_lea.sflag [#allocation8], %s2696_s17 }
 0x366   : > { %v2115_v26 = vpop.f32.mrf.mxu1  ;;  %s3082_s1 = scalar_lea.hbm %s3145_s8, %s3159_s9  ;;  %s2439_s26 = scalar_lea.vmem %s3074_s30, 1024 }
 0x367   : > { %1638 = vst [vmem:[%s3037_s21 + $0x20] sm:$0xff] %v1596_v24  ;;  %v1607_v28 = vadd.f32 %v2115_v26, %v1446_v25  ;;  %p2440_p5 = scmp.ne.s32.totalorder %s3074_s30, %s2439_s26  ;;  %s2545_s13 = smov [#allocation7]  }
 0x368   : > { %v1598_v29 = vpop.f32.mrf.mxu1  ;;  %s2443_s23 = sshll.u32 %s2545_s13, 4  ;;  %s2444_s23 = int_to_ptr.vmem [resolvable:$false] %s2443_s23 }
 0x369   : > { %1641 = vst [vmem:[%s3037_s21 + $0x38] sm:$0xff] %v1607_v28  ;;  %v1599_v30 = vadd.f32 %v1598_v29, %v1438_v16  ;;  %p2441_p6 = pnand %p2440_p5, %p2651_p8  ;;  %s2445_s18 = scalar_lea.vmem %s2444_s23, 2048 }
 0x36a   : > { %p2446_p10 = scmp.lt.s32.totalorder %s3074_s30, %s2444_s23  ;;  %p2447_p11 = scmp.lt.s32.totalorder %s2445_s18, %s2439_s26 }
 0x36b   : > { %1639 = vst [vmem:[%s3037_s21 + $0x28] sm:$0xff] %v1599_v30  ;;  %p2442_p7 = pneg %p2441_p6 }
 0x36c   : > { %p2448_p12 = por %p2447_p11, %p2446_p10 }
 0x36e   : > { %p2449_p13 = pnand %p2448_p12, %p2442_p7 }
 0x370   : > { %2452 = shalt.err (!%p2449_p13)
}
 0x371   : > { %s2453_s0 = scalar_lea.hbm %s3082_s1, 1024  ;;  %s2457_s9 = scalar_lea.hbm %s3145_s8, 4096 }
 0x372   : > { %p2454_p0 = scmp.ne.s32.totalorder %s3082_s1, %s2453_s0  ;;  %p2458_p3 = scmp.lt.s32.totalorder %s3082_s1, %s3145_s8 }
 0x373   : > { %p2459_p4 = scmp.lt.s32.totalorder %s2457_s9, %s2453_s0 }
 0x374   : > { %p2455_p1 = pnand %p2454_p0, %p2651_p8 }
 0x375   : > { %p2460_p5 = por %p2459_p4, %p2458_p3 }
 0x376   : > { %p2456_p2 = pneg %p2455_p1 }
 0x378   : > { %p2461_p6 = pnand %p2460_p5, %p2456_p2 }
 0x37a   : > { %2464 = shalt.err (!%p2461_p6)
}
 0x37b   : > { %s3160_s18 = smov 128  }
 0x37c   : > { %2145 = dma.vmem_to_hbm [thread:$0]  (%p2651_p8), %s3074_s30, 1024, %s3082_s1, %s1648_s15, %s3160_s18, %s2543_s16, %s2544_s22  }
 0x37d PF: > { %p2155_p7 = scmp.ge.s32.totalorder %s2535_s12, 2  ;;  %s1694_s26 = sand.u32 1, %s2507_s27  }
 0x37e   : > { %s1695_s13 = scalar_lea.sflag [#allocation6], %s1694_s26 }
 0x37f   : > { %p2149_p10 = pnand %p2155_p7, %p2655_p9 }
 0x381   : > { %p2150_p11 = pneg %p2149_p10 }
 0x383   : > { %2498 = dma.done.wait (%p2150_p11), %s1695_s13, 1024  }
 0x384   : > { %2500 = vsyncadd (%p2150_p11), %s1695_s13, 4294966272  ;;  %s1704_s23 = scalar_lea.sflag [#allocation8], %s1694_s26 }
 0x385   : > { %2502 = dma.done.wait (%p2150_p11), %s1704_s23, 1024  }
 0x386   : > { %2504 = vsyncadd (%p2150_p11), %s1704_s23, 4294966272  ;;  %s25_s12 = sadd.s32 1, %s2535_s12   ;;  %s3161_s19 = sld [smem:[#allocation11_spill]] }
 0x387   : > { %p22_p12 = scmp.ge.s32.totalorder %s25_s12, 6   ;;  %s3162_s16 = sld [smem:[#allocation12_spill]] }
 0x388   : > { %s3163_s27 = smov %s2511_s28  ;;  %s3164_s28 = smov %s2515_s29 }
 0x389   : > { %s3165_s29 = smov %s2663_s24  ;;  %s3166_s30 = smov %s2527_s10 }
 0x38a   : > { %s3167_s9 = smov %s2531_s11  ;;  %24 = sbr.rel (!%p22_p12) target bundleno = 10 (0xa), region = 195 }
 0x38c   : > { %s3168_s10 = smov %s3161_s19 }
 0x38d   : > { %s3169_s11 = smov %s3162_s16 }
 0x38f   :  { %1709 = vsyncpa [#allocation6], 1 }
 0x390   :  { %1711 = vsyncpa [#allocation6 + $0x1], 1 }
 0x391   :  { %1712 = vsyncpa [#allocation8], 1 }
 0x392   :  { %1714 = vsyncpa [#allocation8 + $0x1], 1 }

</bundles_post_ra>
